<compile_context>
chip_gen: v7x
topology: tpu7x:2x2x1
jax: 0.10.0
libtpu: 0.0.40
codegen_flags: <defaults>
</compile_context>

<pallas_src>
import functools

import jax
import jax.numpy as jnp
from jax.experimental import pallas as pl
from jax.experimental.pallas import tpu as pltpu


# ------------------------------ spec helpers ------------------------------- #

def _smem_spec():
    # whole (1,1) scalar array placed in SMEM
    return pl.BlockSpec(memory_space=pltpu.MemorySpace.SMEM)


def _resident(shape):
    # full-array block with a constant index map: DMA'd once, stays VMEM-resident
    return pl.BlockSpec(shape, lambda i: (0, 0))


def _round_tile(tile, full):
    """Largest usable tile: full array, or a multiple of 8 rows."""
    t = min(tile, full)
    if t < full:
        t = max(8, (t // 8) * 8)
    return t


# ----------------------------- Pallas kernels ------------------------------ #

def _edge_msg_kernel(eeps_ref, xs_ref, xd_ref, e_ref,
                     w1xs_ref, w1xd_ref, w1e_ref, b1_ref, w2_ref, b2_ref,
                     w11x_ref, w11e_ref, b11_ref, w12a_ref, b12a_ref,
                     e_new_ref, msg_ref):
    """Fused EdgeModel MLP + NodeModel message MLP over one tile of TE edges.

    msg_ref has H+1 columns: the last column is a constant 1 (degree counter),
    produced for free by the augmented message weight/bias.
    """
    x_src = xs_ref[...]                        # (TE, Fx)
    x_dst = xd_ref[...]                        # (TE, Fx)
    e_old = e_ref[...]                         # (TE, Fe)

    # EdgeModel first Linear over [x_src || x_dst || e_old] as split matmuls
    # (no HBM/VMEM concat needed).
    h = (jnp.dot(x_src, w1xs_ref[...], preferred_element_type=jnp.float32)
         + jnp.dot(x_dst, w1xd_ref[...], preferred_element_type=jnp.float32)
         + jnp.dot(e_old, w1e_ref[...], preferred_element_type=jnp.float32)
         + b1_ref[...])
    h = jnp.maximum(h, 0.0)
    e_upd = jnp.dot(h, w2_ref[...], preferred_element_type=jnp.float32) + b2_ref[...]
    e_new = (1.0 + eeps_ref[0, 0]) * e_old + e_upd
    e_new_ref[...] = e_new

    # NodeModel message MLP on [x[src] || e_new]; e_new is produced in-kernel.
    h1 = (jnp.dot(x_src, w11x_ref[...], preferred_element_type=jnp.float32)
          + jnp.dot(e_new, w11e_ref[...], preferred_element_type=jnp.float32)
          + b11_ref[...])
    h1 = jnp.maximum(h1, 0.0)
    # augmented weight/bias: last output column is 0*h1 + 1 -> per-edge count.
    msg_ref[...] = (jnp.dot(h1, w12a_ref[...], preferred_element_type=jnp.float32)
                    + b12a_ref[...])


def _make_node_kernel(H):
    """NodeModel second MLP + residual over one tile of TN nodes."""

    def kernel(neps_ref, x_ref, s_ref,
               w21x_ref, w21a_ref, b21_ref, w22_ref, b22_ref, x_new_ref):
        x_old = x_ref[...]                     # (TN, Fx)
        s = s_ref[...]                         # (TN, H+1) = [msg_sum || count]
        cnt = s[:, H:]                         # (TN, 1)
        agg = s[:, :H] / jnp.maximum(cnt, 1.0)  # scatter_mean result, computed in VMEM

        h2 = (jnp.dot(x_old, w21x_ref[...], preferred_element_type=jnp.float32)
              + jnp.dot(agg, w21a_ref[...], preferred_element_type=jnp.float32)
              + b21_ref[...])
        h2 = jnp.maximum(h2, 0.0)
        x_upd = jnp.dot(h2, w22_ref[...], preferred_element_type=jnp.float32) + b22_ref[...]
        x_new_ref[...] = (1.0 + neps_ref[0, 0]) * x_old + x_upd

    return kernel


# ------------------------------- wrapper ----------------------------------- #

def meta_layer_forward(x, edge_index, edge_attr, params, *,
                       edge_tile=1024, node_tile=1024):
    N, Fx = x.shape
    E, Fe = edge_attr.shape
    H = params["n_w12"].shape[1]
    src, dst = edge_index[0], edge_index[1]

    # Data-dependent row gathers left to XLA (glue).
    # TODO(synk): gathers could move in-kernel (x VMEM-resident + per-tile index
    # slices) if the gather pass ever dominates; XLA's gather is used here instead.
    x_src = jnp.take(x, src, axis=0)                               # (E, Fx)
    x_dst = jnp.take(x, dst, axis=0)                               # (E, Fx)

    # Augment the message output Linear with a constant-one column so the per-edge
    # degree counter rides along the message matmul for free (single segment_sum).
    w12_aug = jnp.concatenate([params["n_w12"],
                               jnp.zeros((H, 1), jnp.float32)], axis=1)   # (H, H+1)
    b12_aug = jnp.concatenate([params["n_b12"],
                               jnp.ones((1, 1), jnp.float32)], axis=1)    # (1, H+1)

    cparams = pltpu.CompilerParams(
        dimension_semantics=("parallel",),          # shard grid across TCs (v7x megacore)
        vmem_limit_bytes=32 * 1024 * 1024,
    )

    # -------- kernel 1: edge update + per-edge message (+count), tiled over E --------
    TE = _round_tile(edge_tile, E)
    e_new, msg_aug = pl.pallas_call(
        _edge_msg_kernel,
        out_shape=(jax.ShapeDtypeStruct((E, Fe), jnp.float32),
                   jax.ShapeDtypeStruct((E, H + 1), jnp.float32)),
        grid=(pl.cdiv(E, TE),),
        in_specs=[
            _smem_spec(),                                          # edge_eps
            pl.BlockSpec((TE, Fx), lambda i: (i, 0)),              # x[src]  (pipelined)
            pl.BlockSpec((TE, Fx), lambda i: (i, 0)),              # x[dst]  (pipelined)
            pl.BlockSpec((TE, Fe), lambda i: (i, 0)),              # edge_attr (pipelined)
            _resident(params["e_w1_xs"].shape), _resident(params["e_w1_xd"].shape),
            _resident(params["e_w1_e"].shape), _resident(params["e_b1"].shape),
            _resident(params["e_w2"].shape), _resident(params["e_b2"].shape),
            _resident(params["n_w11_x"].shape), _resident(params["n_w11_e"].shape),
            _resident(params["n_b11"].shape),
            _resident(w12_aug.shape), _resident(b12_aug.shape),
        ],
        out_specs=(pl.BlockSpec((TE, Fe), lambda i: (i, 0)),
                   pl.BlockSpec((TE, H + 1), lambda i: (i, 0))),
        compiler_params=cparams,
    )(params["edge_eps"], x_src, x_dst, edge_attr,
      params["e_w1_xs"], params["e_w1_xd"], params["e_w1_e"], params["e_b1"],
      params["e_w2"], params["e_b2"],
      params["n_w11_x"], params["n_w11_e"], params["n_b11"],
      w12_aug, b12_aug)

    # scatter_mean numerator + denominator in ONE sparse XLA scatter-add:
    #   sum_aug[:, :H] = per-node message sums, sum_aug[:, H] = in-degree count.
    # TODO(synk): the data-dependent scatter itself has no clean tiled-Pallas
    # equivalent without serialization; segment_sum is the sparse O(E*H) path.
    sum_aug = jax.ops.segment_sum(msg_aug, dst, num_segments=N)    # (N, H+1)

    # -------- kernel 2: mean + node update, tiled over N --------
    TN = _round_tile(node_tile, N)
    x_new = pl.pallas_call(
        _make_node_kernel(H),
        out_shape=jax.ShapeDtypeStruct((N, Fx), jnp.float32),
        grid=(pl.cdiv(N, TN),),
        in_specs=[
            _smem_spec(),                                          # node_eps
            pl.BlockSpec((TN, Fx), lambda i: (i, 0)),              # x         (pipelined)
            pl.BlockSpec((TN, H + 1), lambda i: (i, 0)),           # [sum||cnt] (pipelined)
            _resident(params["n_w21_x"].shape), _resident(params["n_w21_a"].shape),
            _resident(params["n_b21"].shape),
            _resident(params["n_w22"].shape), _resident(params["n_b22"].shape),
        ],
        out_specs=pl.BlockSpec((TN, Fx), lambda i: (i, 0)),
        compiler_params=cparams,
    )(params["node_eps"], x, sum_aug,
      params["n_w21_x"], params["n_w21_a"], params["n_b21"],
      params["n_w22"], params["n_b22"])

    return x_new, e_new


# --------------------------- reference (pure JAX) --------------------------- #

def meta_layer_reference(x, edge_index, edge_attr, params):
    N = x.shape[0]
    E = edge_attr.shape[0]
    src, dst = edge_index[0], edge_index[1]
    xs, xd = x[src], x[dst]
    # edge model (first Linear over the concat == sum of split matmuls)
    h = jnp.maximum(xs @ params["e_w1_xs"] + xd @ params["e_w1_xd"]
                    + edge_attr @ params["e_w1_e"] + params["e_b1"], 0.0)
    e_new = ((1.0 + params["edge_eps"][0, 0]) * edge_attr
             + h @ params["e_w2"] + params["e_b2"])
    # node model
    h1 = jnp.maximum(xs @ params["n_w11_x"] + e_new @ params["n_w11_e"]
                     + params["n_b11"], 0.0)
    msg = h1 @ params["n_w12"] + params["n_b12"]
    summed = jax.ops.segment_sum(msg, dst, num_segments=N)
    cnt = jax.ops.segment_sum(jnp.ones((E,), jnp.float32), dst, num_segments=N)
    agg = summed / jnp.maximum(cnt, 1.0)[:, None]
    h2 = jnp.maximum(x @ params["n_w21_x"] + agg @ params["n_w21_a"]
                     + params["n_b21"], 0.0)
    x_new = ((1.0 + params["node_eps"][0, 0]) * x
             + h2 @ params["n_w22"] + params["n_b22"])
    return x_new, e_new


# --------------------------------- params ----------------------------------- #

def init_params(key, Fx, Fe, H):
    ks = jax.random.split(key, 10)

    def u(k, shape, fan_in):
        return jax.random.uniform(k, shape, jnp.float32, -1.0, 1.0) / jnp.sqrt(float(fan_in))

    return {
        # MetaLayer eps parameters (initialized to 0, as in the module)
        "edge_eps": jnp.zeros((1, 1), jnp.float32),
        "node_eps": jnp.zeros((1, 1), jnp.float32),
        # EdgeModel: Lin(2Fx+Fe, H) split across [x_src || x_dst || e], ReLU, Lin(H, Fe)
        "e_w1_xs": u(ks[0], (Fx, H), 2 * Fx + Fe),
        "e_w1_xd": u(ks[1], (Fx, H), 2 * Fx + Fe),
        "e_w1_e": u(ks[2], (Fe, H), 2 * Fx + Fe),
        "e_b1": jnp.zeros((1, H), jnp.float32),
        "e_w2": u(ks[3], (H, Fe), H),
        "e_b2": jnp.zeros((1, Fe), jnp.float32),
        # NodeModel mlp1: Lin(Fx+Fe, H) split across [x[row] || e_new], then Lin(H, H)
        "n_w11_x": u(ks[4], (Fx, H), Fx + Fe),
        "n_w11_e": u(ks[5], (Fe, H), Fx + Fe),
        "n_b11": jnp.zeros((1, H), jnp.float32),
        "n_w12": u(ks[6], (H, H), H),
        "n_b12": jnp.zeros((1, H), jnp.float32),
        # NodeModel mlp2: Lin(Fx+H, H) split across [x || agg] -> ReLU -> Lin(H, Fx)
        "n_w21_x": u(ks[7], (Fx, H), Fx + H),
        "n_w21_a": u(ks[8], (H, H), Fx + H),
        "n_b21": jnp.zeros((1, H), jnp.float32),
        "n_w22": u(ks[9], (H, Fx), H),
        "n_b22": jnp.zeros((1, Fx), jnp.float32),
    }


# --------------------------------- main ------------------------------------ #

if __name__ == "__main__":
    N, E, Fx, Fe, H = 64, 256, 8, 8, 32

    key = jax.random.PRNGKey(0)
    kx, ke, ki, kp = jax.random.split(key, 4)

    x = jax.random.normal(kx, (N, Fx), jnp.float32)
    edge_attr = jax.random.normal(ke, (E, Fe), jnp.float32)
    edge_index = jax.random.randint(ki, (2, E), 0, N, jnp.int32)
    params = init_params(kp, Fx, Fe, H)

    fwd = jax.jit(functools.partial(meta_layer_forward, edge_tile=128, node_tile=32))
    x_out, e_out = fwd(x, edge_index, edge_attr, params)
    jax.block_until_ready((x_out, e_out))

    x_ref, e_ref = meta_layer_reference(x, edge_index, edge_attr, params)
    assert jnp.allclose(e_out, e_ref, rtol=1e-3, atol=1e-3), "edge output mismatch"
    assert jnp.allclose(x_out, x_ref, rtol=1e-3, atol=1e-3), "node output mismatch"

    print("KERNEL_OK")
</pallas_src>

<mosaic_0001>
module attributes {stable_mosaic.version = 11 : i64} {
  func.func @_edge_msg_kernel(%arg0: i32, %arg1: memref<1x1xf32, #tpu.memory_space<smem>>, %arg2: memref<128x8xf32, #tpu.memory_space<vmem>>, %arg3: memref<128x8xf32, #tpu.memory_space<vmem>>, %arg4: memref<128x8xf32, #tpu.memory_space<vmem>>, %arg5: memref<8x32xf32, #tpu.memory_space<vmem>>, %arg6: memref<8x32xf32, #tpu.memory_space<vmem>>, %arg7: memref<8x32xf32, #tpu.memory_space<vmem>>, %arg8: memref<1x32xf32, #tpu.memory_space<vmem>>, %arg9: memref<32x8xf32, #tpu.memory_space<vmem>>, %arg10: memref<1x8xf32, #tpu.memory_space<vmem>>, %arg11: memref<8x32xf32, #tpu.memory_space<vmem>>, %arg12: memref<8x32xf32, #tpu.memory_space<vmem>>, %arg13: memref<1x32xf32, #tpu.memory_space<vmem>>, %arg14: memref<32x33xf32, #tpu.memory_space<vmem>>, %arg15: memref<1x33xf32, #tpu.memory_space<vmem>>, %arg16: memref<128x8xf32, #tpu.memory_space<vmem>>, %arg17: memref<128x33xf32, #tpu.memory_space<vmem>>) attributes {dimension_semantics = [#tpu.dimension_semantics<parallel>], iteration_bounds = array<i64: 2>, scalar_prefetch = 0 : i64, scratch_operands = 0 : i64, tpu.core_type = #tpu.core_type<tc>, window_params = [{transform_indices = @transform_0, window_bounds = array<i64: 1, 1>}, {transform_indices = @transform_1, window_bounds = array<i64: 128, 8>}, {transform_indices = @transform_2, window_bounds = array<i64: 128, 8>}, {transform_indices = @transform_3, window_bounds = array<i64: 128, 8>}, {pipeline_mode = #tpu.pipeline_mode<synchronous>, transform_indices = @transform_4, window_bounds = array<i64: 8, 32>}, {pipeline_mode = #tpu.pipeline_mode<synchronous>, transform_indices = @transform_5, window_bounds = array<i64: 8, 32>}, {pipeline_mode = #tpu.pipeline_mode<synchronous>, transform_indices = @transform_6, window_bounds = array<i64: 8, 32>}, {pipeline_mode = #tpu.pipeline_mode<synchronous>, transform_indices = @transform_7, window_bounds = array<i64: 1, 32>}, {pipeline_mode = #tpu.pipeline_mode<synchronous>, transform_indices = @transform_8, window_bounds = array<i64: 32, 8>}, {pipeline_mode = #tpu.pipeline_mode<synchronous>, transform_indices = @transform_9, window_bounds = array<i64: 1, 8>}, {pipeline_mode = #tpu.pipeline_mode<synchronous>, transform_indices = @transform_10, window_bounds = array<i64: 8, 32>}, {pipeline_mode = #tpu.pipeline_mode<synchronous>, transform_indices = @transform_11, window_bounds = array<i64: 8, 32>}, {pipeline_mode = #tpu.pipeline_mode<synchronous>, transform_indices = @transform_12, window_bounds = array<i64: 1, 32>}, {pipeline_mode = #tpu.pipeline_mode<synchronous>, transform_indices = @transform_13, window_bounds = array<i64: 32, 33>}, {pipeline_mode = #tpu.pipeline_mode<synchronous>, transform_indices = @transform_14, window_bounds = array<i64: 1, 33>}, {transform_indices = @transform_15, window_bounds = array<i64: 128, 8>}, {transform_indices = @transform_16, window_bounds = array<i64: 128, 33>}]} {
    %c0 = arith.constant 0 : index
    %c0_0 = arith.constant 0 : index
    %0 = vector.load %arg2[%c0, %c0_0] : memref<128x8xf32, #tpu.memory_space<vmem>>, vector<128x8xf32>
    %c0_1 = arith.constant 0 : index
    %c0_2 = arith.constant 0 : index
    %1 = vector.load %arg3[%c0_1, %c0_2] : memref<128x8xf32, #tpu.memory_space<vmem>>, vector<128x8xf32>
    %c0_3 = arith.constant 0 : index
    %c0_4 = arith.constant 0 : index
    %2 = vector.load %arg4[%c0_3, %c0_4] : memref<128x8xf32, #tpu.memory_space<vmem>>, vector<128x8xf32>
    %c0_5 = arith.constant 0 : index
    %c0_6 = arith.constant 0 : index
    %3 = vector.load %arg5[%c0_5, %c0_6] : memref<8x32xf32, #tpu.memory_space<vmem>>, vector<8x32xf32>
    %cst = arith.constant dense<0.000000e+00> : vector<128x32xf32>
    %4 = tpu.matmul %0, %3, %cst {dimension_numbers = #tpu.dot_dimension_numbers<[1], [0], [0], [1], [0, 0, 1, 1], [], []>} : vector<128x8xf32>, vector<8x32xf32>, vector<128x32xf32> -> vector<128x32xf32>
    %c0_7 = arith.constant 0 : index
    %c0_8 = arith.constant 0 : index
    %5 = vector.load %arg6[%c0_7, %c0_8] : memref<8x32xf32, #tpu.memory_space<vmem>>, vector<8x32xf32>
    %cst_9 = arith.constant dense<0.000000e+00> : vector<128x32xf32>
    %6 = tpu.matmul %1, %5, %cst_9 {dimension_numbers = #tpu.dot_dimension_numbers<[1], [0], [0], [1], [0, 0, 1, 1], [], []>} : vector<128x8xf32>, vector<8x32xf32>, vector<128x32xf32> -> vector<128x32xf32>
    %7 = arith.addf %4, %6 : vector<128x32xf32>
    %c0_10 = arith.constant 0 : index
    %c0_11 = arith.constant 0 : index
    %8 = vector.load %arg7[%c0_10, %c0_11] : memref<8x32xf32, #tpu.memory_space<vmem>>, vector<8x32xf32>
    %cst_12 = arith.constant dense<0.000000e+00> : vector<128x32xf32>
    %9 = tpu.matmul %2, %8, %cst_12 {dimension_numbers = #tpu.dot_dimension_numbers<[1], [0], [0], [1], [0, 0, 1, 1], [], []>} : vector<128x8xf32>, vector<8x32xf32>, vector<128x32xf32> -> vector<128x32xf32>
    %10 = arith.addf %7, %9 : vector<128x32xf32>
    %c0_13 = arith.constant 0 : index
    %c0_14 = arith.constant 0 : index
    %11 = vector.load %arg8[%c0_13, %c0_14] : memref<1x32xf32, #tpu.memory_space<vmem>>, vector<1x32xf32>
    %12 = vector.broadcast %11 : vector<1x32xf32> to vector<128x32xf32>
    %13 = arith.addf %10, %12 : vector<128x32xf32>
    %cst_15 = arith.constant 0.000000e+00 : f32
    %14 = vector.broadcast %cst_15 : f32 to vector<128x32xf32>
    %15 = arith.maximumf %13, %14 : vector<128x32xf32>
    %c0_16 = arith.constant 0 : index
    %c0_17 = arith.constant 0 : index
    %16 = vector.load %arg9[%c0_16, %c0_17] : memref<32x8xf32, #tpu.memory_space<vmem>>, vector<32x8xf32>
    %cst_18 = arith.constant dense<0.000000e+00> : vector<128x8xf32>
    %17 = tpu.matmul %15, %16, %cst_18 {dimension_numbers = #tpu.dot_dimension_numbers<[1], [0], [0], [1], [0, 0, 1, 1], [], []>} : vector<128x32xf32>, vector<32x8xf32>, vector<128x8xf32> -> vector<128x8xf32>
    %c0_19 = arith.constant 0 : index
    %c0_20 = arith.constant 0 : index
    %18 = vector.load %arg10[%c0_19, %c0_20] : memref<1x8xf32, #tpu.memory_space<vmem>>, vector<1x8xf32>
    %19 = vector.broadcast %18 : vector<1x8xf32> to vector<128x8xf32>
    %20 = arith.addf %17, %19 : vector<128x8xf32>
    %c0_21 = arith.constant 0 : index
    %c0_22 = arith.constant 0 : index
    %21 = memref.load %arg1[%c0_21, %c0_22] : memref<1x1xf32, #tpu.memory_space<smem>>
    %cst_23 = arith.constant 1.000000e+00 : f32
    %22 = arith.addf %cst_23, %21 : f32
    %23 = vector.broadcast %22 : f32 to vector<128x8xf32>
    %24 = arith.mulf %23, %2 : vector<128x8xf32>
    %25 = arith.addf %24, %20 : vector<128x8xf32>
    %c0_24 = arith.constant 0 : index
    %c0_25 = arith.constant 0 : index
    %26 = vector.load %arg16[%c0_24, %c0_25] : memref<128x8xf32, #tpu.memory_space<vmem>>, vector<128x8xf32>
    tpu.vector_store %arg16[%c0_24, %c0_25], %25 {strides = array<i32>} : memref<128x8xf32, #tpu.memory_space<vmem>>, vector<128x8xf32>,
    %c0_26 = arith.constant 0 : index
    %c0_27 = arith.constant 0 : index
    %27 = vector.load %arg11[%c0_26, %c0_27] : memref<8x32xf32, #tpu.memory_space<vmem>>, vector<8x32xf32>
    %cst_28 = arith.constant dense<0.000000e+00> : vector<128x32xf32>
    %28 = tpu.matmul %0, %27, %cst_28 {dimension_numbers = #tpu.dot_dimension_numbers<[1], [0], [0], [1], [0, 0, 1, 1], [], []>} : vector<128x8xf32>, vector<8x32xf32>, vector<128x32xf32> -> vector<128x32xf32>
    %c0_29 = arith.constant 0 : index
    %c0_30 = arith.constant 0 : index
    %29 = vector.load %arg12[%c0_29, %c0_30] : memref<8x32xf32, #tpu.memory_space<vmem>>, vector<8x32xf32>
    %cst_31 = arith.constant dense<0.000000e+00> : vector<128x32xf32>
    %30 = tpu.matmul %25, %29, %cst_31 {dimension_numbers = #tpu.dot_dimension_numbers<[1], [0], [0], [1], [0, 0, 1, 1], [], []>} : vector<128x8xf32>, vector<8x32xf32>, vector<128x32xf32> -> vector<128x32xf32>
    %31 = arith.addf %28, %30 : vector<128x32xf32>
    %c0_32 = arith.constant 0 : index
    %c0_33 = arith.constant 0 : index
    %32 = vector.load %arg13[%c0_32, %c0_33] : memref<1x32xf32, #tpu.memory_space<vmem>>, vector<1x32xf32>
    %33 = vector.broadcast %32 : vector<1x32xf32> to vector<128x32xf32>
    %34 = arith.addf %31, %33 : vector<128x32xf32>
    %cst_34 = arith.constant 0.000000e+00 : f32
    %35 = vector.broadcast %cst_34 : f32 to vector<128x32xf32>
    %36 = arith.maximumf %34, %35 : vector<128x32xf32>
    %c0_35 = arith.constant 0 : index
    %c0_36 = arith.constant 0 : index
    %37 = vector.load %arg14[%c0_35, %c0_36] : memref<32x33xf32, #tpu.memory_space<vmem>>, vector<32x33xf32>
    %cst_37 = arith.constant dense<0.000000e+00> : vector<128x33xf32>
    %38 = tpu.matmul %36, %37, %cst_37 {dimension_numbers = #tpu.dot_dimension_numbers<[1], [0], [0], [1], [0, 0, 1, 1], [], []>} : vector<128x32xf32>, vector<32x33xf32>, vector<128x33xf32> -> vector<128x33xf32>
    %c0_38 = arith.constant 0 : index
    %c0_39 = arith.constant 0 : index
    %39 = vector.load %arg15[%c0_38, %c0_39] : memref<1x33xf32, #tpu.memory_space<vmem>>, vector<1x33xf32>
    %40 = vector.broadcast %39 : vector<1x33xf32> to vector<128x33xf32>
    %41 = arith.addf %38, %40 : vector<128x33xf32>
    %c0_40 = arith.constant 0 : index
    %c0_41 = arith.constant 0 : index
    %42 = vector.load %arg17[%c0_40, %c0_41] : memref<128x33xf32, #tpu.memory_space<vmem>>, vector<128x33xf32>
    tpu.vector_store %arg17[%c0_40, %c0_41], %41 {strides = array<i32>} : memref<128x33xf32, #tpu.memory_space<vmem>>, vector<128x33xf32>,
    return
  }
  func.func @transform_0(%arg0: i32) -> (i32, i32) {
    %c0_i32 = arith.constant 0 : i32
    %c0_i32_0 = arith.constant 0 : i32
    %c0_i32_1 = arith.constant 0 : i32
    return %c0_i32, %c0_i32_0 : i32, i32
  }
  func.func @transform_1(%arg0: i32) -> (i32, i32) {
    %c0_i32 = arith.constant 0 : i32
    %c0_i32_0 = arith.constant 0 : i32
    return %arg0, %c0_i32 : i32, i32
  }
  func.func @transform_2(%arg0: i32) -> (i32, i32) {
    %c0_i32 = arith.constant 0 : i32
    %c0_i32_0 = arith.constant 0 : i32
    return %arg0, %c0_i32 : i32, i32
  }
  func.func @transform_3(%arg0: i32) -> (i32, i32) {
    %c0_i32 = arith.constant 0 : i32
    %c0_i32_0 = arith.constant 0 : i32
    return %arg0, %c0_i32 : i32, i32
  }
  func.func @transform_4(%arg0: i32) -> (i32, i32) {
    %c0_i32 = arith.constant 0 : i32
    %c0_i32_0 = arith.constant 0 : i32
    %c0_i32_1 = arith.constant 0 : i32
    return %c0_i32, %c0_i32_0 : i32, i32
  }
  func.func @transform_5(%arg0: i32) -> (i32, i32) {
    %c0_i32 = arith.constant 0 : i32
    %c0_i32_0 = arith.constant 0 : i32
    %c0_i32_1 = arith.constant 0 : i32
    return %c0_i32, %c0_i32_0 : i32, i32
  }
  func.func @transform_6(%arg0: i32) -> (i32, i32) {
    %c0_i32 = arith.constant 0 : i32
    %c0_i32_0 = arith.constant 0 : i32
    %c0_i32_1 = arith.constant 0 : i32
    return %c0_i32, %c0_i32_0 : i32, i32
  }
  func.func @transform_7(%arg0: i32) -> (i32, i32) {
    %c0_i32 = arith.constant 0 : i32
    %c0_i32_0 = arith.constant 0 : i32
    %c0_i32_1 = arith.constant 0 : i32
    return %c0_i32, %c0_i32_0 : i32, i32
  }
  func.func @transform_8(%arg0: i32) -> (i32, i32) {
    %c0_i32 = arith.constant 0 : i32
    %c0_i32_0 = arith.constant 0 : i32
    %c0_i32_1 = arith.constant 0 : i32
    return %c0_i32, %c0_i32_0 : i32, i32
  }
  func.func @transform_9(%arg0: i32) -> (i32, i32) {
    %c0_i32 = arith.constant 0 : i32
    %c0_i32_0 = arith.constant 0 : i32
    %c0_i32_1 = arith.constant 0 : i32
    return %c0_i32, %c0_i32_0 : i32, i32
  }
  func.func @transform_10(%arg0: i32) -> (i32, i32) {
    %c0_i32 = arith.constant 0 : i32
    %c0_i32_0 = arith.constant 0 : i32
    %c0_i32_1 = arith.constant 0 : i32
    return %c0_i32, %c0_i32_0 : i32, i32
  }
  func.func @transform_11(%arg0: i32) -> (i32, i32) {
    %c0_i32 = arith.constant 0 : i32
    %c0_i32_0 = arith.constant 0 : i32
    %c0_i32_1 = arith.constant 0 : i32
    return %c0_i32, %c0_i32_0 : i32, i32
  }
  func.func @transform_12(%arg0: i32) -> (i32, i32) {
    %c0_i32 = arith.constant 0 : i32
    %c0_i32_0 = arith.constant 0 : i32
    %c0_i32_1 = arith.constant 0 : i32
    return %c0_i32, %c0_i32_0 : i32, i32
  }
  func.func @transform_13(%arg0: i32) -> (i32, i32) {
    %c0_i32 = arith.constant 0 : i32
    %c0_i32_0 = arith.constant 0 : i32
    %c0_i32_1 = arith.constant 0 : i32
    return %c0_i32, %c0_i32_0 : i32, i32
  }
  func.func @transform_14(%arg0: i32) -> (i32, i32) {
    %c0_i32 = arith.constant 0 : i32
    %c0_i32_0 = arith.constant 0 : i32
    %c0_i32_1 = arith.constant 0 : i32
    return %c0_i32, %c0_i32_0 : i32, i32
  }
  func.func @transform_15(%arg0: i32) -> (i32, i32) {
    %c0_i32 = arith.constant 0 : i32
    %c0_i32_0 = arith.constant 0 : i32
    return %arg0, %c0_i32 : i32, i32
  }
  func.func @transform_16(%arg0: i32) -> (i32, i32) {
    %c0_i32 = arith.constant 0 : i32
    %c0_i32_0 = arith.constant 0 : i32
    return %arg0, %c0_i32 : i32, i32
  }
}

module attributes {stable_mosaic.version = 11 : i64} {
  func.func @kernel(%arg0: i32, %arg1: memref<1x1xf32, #tpu.memory_space<smem>>, %arg2: memref<32x8xf32, #tpu.memory_space<vmem>>, %arg3: memref<32x33xf32, #tpu.memory_space<vmem>>, %arg4: memref<8x32xf32, #tpu.memory_space<vmem>>, %arg5: memref<32x32xf32, #tpu.memory_space<vmem>>, %arg6: memref<1x32xf32, #tpu.memory_space<vmem>>, %arg7: memref<32x8xf32, #tpu.memory_space<vmem>>, %arg8: memref<1x8xf32, #tpu.memory_space<vmem>>, %arg9: memref<32x8xf32, #tpu.memory_space<vmem>>) attributes {dimension_semantics = [#tpu.dimension_semantics<parallel>], iteration_bounds = array<i64: 2>, scalar_prefetch = 0 : i64, scratch_operands = 0 : i64, tpu.core_type = #tpu.core_type<tc>, window_params = [{transform_indices = @transform_0, window_bounds = array<i64: 1, 1>}, {transform_indices = @transform_1, window_bounds = array<i64: 32, 8>}, {transform_indices = @transform_2, window_bounds = array<i64: 32, 33>}, {pipeline_mode = #tpu.pipeline_mode<synchronous>, transform_indices = @transform_3, window_bounds = array<i64: 8, 32>}, {pipeline_mode = #tpu.pipeline_mode<synchronous>, transform_indices = @transform_4, window_bounds = array<i64: 32, 32>}, {pipeline_mode = #tpu.pipeline_mode<synchronous>, transform_indices = @transform_5, window_bounds = array<i64: 1, 32>}, {pipeline_mode = #tpu.pipeline_mode<synchronous>, transform_indices = @transform_6, window_bounds = array<i64: 32, 8>}, {pipeline_mode = #tpu.pipeline_mode<synchronous>, transform_indices = @transform_7, window_bounds = array<i64: 1, 8>}, {transform_indices = @transform_8, window_bounds = array<i64: 32, 8>}]} {
    %c0 = arith.constant 0 : index
    %c0_0 = arith.constant 0 : index
    %0 = vector.load %arg2[%c0, %c0_0] : memref<32x8xf32, #tpu.memory_space<vmem>>, vector<32x8xf32>
    %c0_1 = arith.constant 0 : index
    %c0_2 = arith.constant 0 : index
    %1 = vector.load %arg3[%c0_1, %c0_2] : memref<32x33xf32, #tpu.memory_space<vmem>>, vector<32x33xf32>
    %2 = vector.extract_strided_slice %1 {offsets = [0, 32], sizes = [32, 1], strides = [1, 1]} : vector<32x33xf32> to vector<32x1xf32>
    %3 = vector.extract_strided_slice %1 {offsets = [0, 0], sizes = [32, 32], strides = [1, 1]} : vector<32x33xf32> to vector<32x32xf32>
    %cst = arith.constant 1.000000e+00 : f32
    %4 = vector.broadcast %cst : f32 to vector<32x1xf32>
    %5 = arith.maximumf %2, %4 : vector<32x1xf32>
    %6 = vector.broadcast %5 : vector<32x1xf32> to vector<32x32xf32>
    %7 = arith.divf %3, %6 : vector<32x32xf32>
    %c0_3 = arith.constant 0 : index
    %c0_4 = arith.constant 0 : index
    %8 = vector.load %arg4[%c0_3, %c0_4] : memref<8x32xf32, #tpu.memory_space<vmem>>, vector<8x32xf32>
    %cst_5 = arith.constant dense<0.000000e+00> : vector<32x32xf32>
    %9 = tpu.matmul %0, %8, %cst_5 {dimension_numbers = #tpu.dot_dimension_numbers<[1], [0], [0], [1], [0, 0, 1, 1], [], []>} : vector<32x8xf32>, vector<8x32xf32>, vector<32x32xf32> -> vector<32x32xf32>
    %c0_6 = arith.constant 0 : index
    %c0_7 = arith.constant 0 : index
    %10 = vector.load %arg5[%c0_6, %c0_7] : memref<32x32xf32, #tpu.memory_space<vmem>>, vector<32x32xf32>
    %cst_8 = arith.constant dense<0.000000e+00> : vector<32x32xf32>
    %11 = tpu.matmul %7, %10, %cst_8 {dimension_numbers = #tpu.dot_dimension_numbers<[1], [0], [0], [1], [0, 0, 1, 1], [], []>} : vector<32x32xf32>, vector<32x32xf32>, vector<32x32xf32> -> vector<32x32xf32>
    %12 = arith.addf %9, %11 : vector<32x32xf32>
    %c0_9 = arith.constant 0 : index
    %c0_10 = arith.constant 0 : index
    %13 = vector.load %arg6[%c0_9, %c0_10] : memref<1x32xf32, #tpu.memory_space<vmem>>, vector<1x32xf32>
    %14 = vector.broadcast %13 : vector<1x32xf32> to vector<32x32xf32>
    %15 = arith.addf %12, %14 : vector<32x32xf32>
    %cst_11 = arith.constant 0.000000e+00 : f32
    %16 = vector.broadcast %cst_11 : f32 to vector<32x32xf32>
    %17 = arith.maximumf %15, %16 : vector<32x32xf32>
    %c0_12 = arith.constant 0 : index
    %c0_13 = arith.constant 0 : index
    %18 = vector.load %arg7[%c0_12, %c0_13] : memref<32x8xf32, #tpu.memory_space<vmem>>, vector<32x8xf32>
    %cst_14 = arith.constant dense<0.000000e+00> : vector<32x8xf32>
    %19 = tpu.matmul %17, %18, %cst_14 {dimension_numbers = #tpu.dot_dimension_numbers<[1], [0], [0], [1], [0, 0, 1, 1], [], []>} : vector<32x32xf32>, vector<32x8xf32>, vector<32x8xf32> -> vector<32x8xf32>
    %c0_15 = arith.constant 0 : index
    %c0_16 = arith.constant 0 : index
    %20 = vector.load %arg8[%c0_15, %c0_16] : memref<1x8xf32, #tpu.memory_space<vmem>>, vector<1x8xf32>
    %21 = vector.broadcast %20 : vector<1x8xf32> to vector<32x8xf32>
    %22 = arith.addf %19, %21 : vector<32x8xf32>
    %c0_17 = arith.constant 0 : index
    %c0_18 = arith.constant 0 : index
    %23 = memref.load %arg1[%c0_17, %c0_18] : memref<1x1xf32, #tpu.memory_space<smem>>
    %cst_19 = arith.constant 1.000000e+00 : f32
    %24 = arith.addf %cst_19, %23 : f32
    %25 = vector.broadcast %24 : f32 to vector<32x8xf32>
    %26 = arith.mulf %25, %0 : vector<32x8xf32>
    %27 = arith.addf %26, %22 : vector<32x8xf32>
    %c0_20 = arith.constant 0 : index
    %c0_21 = arith.constant 0 : index
    %28 = vector.load %arg9[%c0_20, %c0_21] : memref<32x8xf32, #tpu.memory_space<vmem>>, vector<32x8xf32>
    tpu.vector_store %arg9[%c0_20, %c0_21], %27 {strides = array<i32>} : memref<32x8xf32, #tpu.memory_space<vmem>>, vector<32x8xf32>,
    return
  }
  func.func @transform_0(%arg0: i32) -> (i32, i32) {
    %c0_i32 = arith.constant 0 : i32
    %c0_i32_0 = arith.constant 0 : i32
    %c0_i32_1 = arith.constant 0 : i32
    return %c0_i32, %c0_i32_0 : i32, i32
  }
  func.func @transform_1(%arg0: i32) -> (i32, i32) {
    %c0_i32 = arith.constant 0 : i32
    %c0_i32_0 = arith.constant 0 : i32
    return %arg0, %c0_i32 : i32, i32
  }
  func.func @transform_2(%arg0: i32) -> (i32, i32) {
    %c0_i32 = arith.constant 0 : i32
    %c0_i32_0 = arith.constant 0 : i32
    return %arg0, %c0_i32 : i32, i32
  }
  func.func @transform_3(%arg0: i32) -> (i32, i32) {
    %c0_i32 = arith.constant 0 : i32
    %c0_i32_0 = arith.constant 0 : i32
    %c0_i32_1 = arith.constant 0 : i32
    return %c0_i32, %c0_i32_0 : i32, i32
  }
  func.func @transform_4(%arg0: i32) -> (i32, i32) {
    %c0_i32 = arith.constant 0 : i32
    %c0_i32_0 = arith.constant 0 : i32
    %c0_i32_1 = arith.constant 0 : i32
    return %c0_i32, %c0_i32_0 : i32, i32
  }
  func.func @transform_5(%arg0: i32) -> (i32, i32) {
    %c0_i32 = arith.constant 0 : i32
    %c0_i32_0 = arith.constant 0 : i32
    %c0_i32_1 = arith.constant 0 : i32
    return %c0_i32, %c0_i32_0 : i32, i32
  }
  func.func @transform_6(%arg0: i32) -> (i32, i32) {
    %c0_i32 = arith.constant 0 : i32
    %c0_i32_0 = arith.constant 0 : i32
    %c0_i32_1 = arith.constant 0 : i32
    return %c0_i32, %c0_i32_0 : i32, i32
  }
  func.func @transform_7(%arg0: i32) -> (i32, i32) {
    %c0_i32 = arith.constant 0 : i32
    %c0_i32_0 = arith.constant 0 : i32
    %c0_i32_1 = arith.constant 0 : i32
    return %c0_i32, %c0_i32_0 : i32, i32
  }
  func.func @transform_8(%arg0: i32) -> (i32, i32) {
    %c0_i32 = arith.constant 0 : i32
    %c0_i32_0 = arith.constant 0 : i32
    return %arg0, %c0_i32 : i32, i32
  }
}

</mosaic_0001>

<bundles_post_ra>
// kernel: meta_layer_forward.3
= control target key start
LH: loop header
LB: loop body
LE: loop exit
PB: predicated region body
PF: predicated region fallthrough
CT: control target
= control target key end

     0   :  { %s959_s29 = smov 0   ;;  %s1049_s0 = inlined_call_operand.<no memory space> [shape: f32[1,1], index: 0, kind: input, shape index: {}]   ;;  %s1050_s1 = inlined_call_operand.vmem [shape: f32[64,8], index: 1, kind: input, shape index: {}]   ;;  %s1051_s2 = inlined_call_operand.vmem [shape: f32[64,33], index: 2, kind: input, shape index: {}]   ;;  %s1052_s3 = inlined_call_operand.vmem [shape: f32[8,32], index: 3, kind: input, shape index: {}]   ;;  %s1053_s4 = inlined_call_operand.vmem [shape: f32[32,32], index: 4, kind: input, shape index: {}]   ;;  %s1054_s5 = inlined_call_operand.vmem [shape: f32[1,32], index: 5, kind: input, shape index: {}]   ;;  %s1055_s6 = inlined_call_operand.vmem [shape: f32[32,8], index: 6, kind: input, shape index: {}]   ;;  %s1056_s7 = inlined_call_operand.vmem [shape: f32[1,8], index: 7, kind: input, shape index: {}]   ;;  %s1057_s8 = inlined_call_operand.vmem [shape: f32[64,8], index: 8, kind: output, shape index: {}]  }
   0x1   :  { %13 = sst [smem:[#allocation2]] %s1049_s0 }
   0x2 LB: > { %s779_s30 = sadd.s32 4294967295, %s908_s29   ;;  %p783_p0 = scmp.ge.s32.totalorder %s908_s29, 1  ;;  %s908_s29 = sphi %s959_s29, %s19_s29  }
   0x3   : > { %p275_p1 = scmp.lt.s32.totalorder %s908_s29, 3 }
   0x5   : > { %p276_p2 = pnand %p783_p0, %p275_p1 }
   0x6   : > { %s784_s9 = sshll.u32 (!%p276_p2), %s779_s30, 2  ;;  %v910_v0 = vmov (!%p276_p2), 32   ;;  %v373_v9 = vld [vmem:[%s1053_s4] sm:$0xff] (!%p276_p2)  ;;  %v374_v10 = vld [vmem:[%s1053_s4 + $0x8] sm:$0xff] (!%p276_p2)  ;;  %v375_v11 = vld [vmem:[%s1053_s4 + $0x10] sm:$0xff] (!%p276_p2)  ;;  %vm475_vm0 = vcmask (!%p276_p2), 64512  }
   0x7   : > { %279 = sbr.rel (%p276_p2) target bundleno = 607 (0x25f), region = 52  ;;  %893 = vset.pattern.permute.xlu1 (!%p276_p2), %v910_v0  ;;  %892 = vset.pattern.permute.xlu0 (!%p276_p2), %v910_v0  ;;  %p315_p3 = scmp.lt.s32.totalorder (!%p276_p2), %s784_s9, 7  ;;  %v863_v12 = vpack.c.bf16 (!%p276_p2), %v374_v10, %v373_v9  ;;  %v376_v13 = vld [vmem:[%s1053_s4 + $0x18] sm:$0xff] (!%p276_p2)  ;;  %v372_v15 = vld [vmem:[%s1052_s3] sm:$0xff] (!%p276_p2)  ;;  %vm377_vm1 = vcmask (!%p276_p2), 261120   ;;  %v589_v33 = vld [vmem:[%s1055_s6 + $0x8] sm:$0xff] (!%p276_p2) }
   0x8   : > { %v867_v14 = vpack.c.bf16 (!%p276_p2), %v376_v13, %v375_v11  ;;  %841 = vmatprep.subr.mxu1 (!%p276_p2), %v372_v15  ;;  %v588_v32 = vld [vmem:[%s1055_s6] sm:$0xff] (!%p276_p2)  ;;  %v590_v37 = vld [vmem:[%s1055_s6 + $0x10] sm:$0xff] (!%p276_p2)  ;;  %v591_v38 = vld [vmem:[%s1055_s6 + $0x18] sm:$0xff] (!%p276_p2)  ;;  %s696_s15 = sld [smem:[#allocation2]] (!%p276_p2) }
   0x9   : > { %864 = vmatprep.subr.bf16.mxu0 (!%p276_p2), %v863_v12  ;;  %842 = vmatpush3.msra.mxu1 (!%p276_p2), %v372_v15  ;;  %v871_v35 = vpack.c.bf16 (!%p276_p2), %v589_v33, %v588_v32  ;;  %v875_v40 = vpack.c.bf16 (!%p276_p2), %v591_v38, %v590_v37  ;;  %v798_v43 = vld [vmem:[%s1054_s5] ss:$0 sm:$0xff] (!%p276_p2) }
   0xa   : > { %866 = vmatpush3.bf16.msra.mxu0 (!%p276_p2), %v863_v12  ;;  %v799_v60 = vld [vmem:[%s1056_s7] ss:$0 sm:$0xff] (!%p276_p2) }
   0xb   : > { %868 = vmatprep.subr.bf16.mxu0 (!%p276_p2), %v867_v14  ;;  %872 = vmatprep.subr.bf16.mxu1 (!%p276_p2), %v871_v35 }
   0xe   : > { %s1059_s9 = smov (!%p315_p3, %s784_s9), 7  ;;  %870 = vmatpush3.bf16.msra.mxu0 %v867_v14  ;;  %s697_s16 = sadd.f32 1.0, %s696_s15 }
   0xf   : > { %s967_s0 = sshll.u32 %s1059_s9, 3 }
  0x10   : > { %s324_s12 = scalar_lea.vmem %s1051_s2, %s967_s0  ;;  %s318_s25 = scalar_lea.vmem %s1050_s1, %s967_s0  ;;  %v698_v59 = vstv %s697_s16 }
  0x11   : > { %v338_v1 = vld [vmem:[%s324_s12 + $0x10] sm:$0xff]  ;;  %v336_v2 = vld [vmem:[%s324_s12] sm:$0xff]  ;;  %v339_v3 = vld [vmem:[%s324_s12 + $0x18] sm:$0xff]  ;;  %s330_s21 = scalar_lea.vmem %s1057_s8, %s967_s0 }
  0x12   : > { %v342_v4 = vmax.f32 %v338_v1, 1.0  ;;  %v340_v5 = vmax.f32 %v336_v2, 1.0  ;;  %v337_v6 = vld [vmem:[%s324_s12 + $0x8] sm:$0xff]  ;;  %v343_v7 = vmax.f32 %v339_v3, 1.0  ;;  %v992_v16 = vld [vmem:[%s318_s25] sm:$0xff]  ;;  %v1000_v18 = vld [vmem:[%s318_s25 + $0x10] sm:$0xff] }
  0x13   : > { %v341_v8 = vmax.f32 %v337_v6, 1.0  ;;  %v994_v17 = vld [vmem:[%s318_s25 + $0x8] sm:$0xff]  ;;  %843 = vmatprep.mubr.msk.f32.mxu1 %vm475_vm0, %v992_v16  ;;  %v1002_v19 = vld [vmem:[%s318_s25 + $0x18] sm:$0xff]  ;;  %v699_v61 = vmul.f32 %v698_v59, %v992_v16 }
  0x14   : > { %356 = vperm.xlu1 %893, %v342_v4   ;;  %346 = vperm.xlu0 %892, %v340_v5   ;;  %v700_v0 = vmul.f32 %v698_v59, %v994_v17  ;;  %v701_v5 = vmul.f32 %v698_v59, %v1000_v18 }
  0x15   : > { %844 = vmatmul.mubr.msk.f32.vlgmr.msra.gmra.mrb[0].mxu1 %vm475_vm0, %v994_v17 }
  0x16   : > { %846 = vmatprep.mubr.msk.f32.mxu1 %vm475_vm0, %v1000_v18  ;;  %874 = vmatpush3.bf16.msra.mxu1 %v871_v35 }
  0x17   : > { %876 = vmatprep.subr.bf16.mxu1 %v875_v40 }
  0x18   : > { %361 = vperm.xlu1 %893, %v343_v7   ;;  %351 = vperm.xlu0 %892, %v341_v8   ;;  %v702_v8 = vmul.f32 %v698_v59, %v1002_v19 }
  0x19   : > { %847 = vmatmul.mubr.msk.f32.gmra.mrb[2].mxu1 %vm475_vm0, %v1002_v19 }
  0x1a   : > { %878 = vmatpush3.bf16.msra.mxu1 %v875_v40 }
  0x93   : > { %v357_v20 = vpop.permute.xlu1 %356  ;;  %v347_v21 = vpop.permute.xlu0 %346 }
  0x94   : > { %894 = vrcp.f32 %v347_v21 }
  0x95   : > { %896 = vrcp.f32 %v357_v20 }
  0x97   : > { %v352_v22 = vpop.permute.xlu0 %351  ;;  %v362_v23 = vpop.permute.xlu1 %361 }
  0x98   : > { %898 = vrcp.f32 %v352_v22 }
  0x99   : > { %900 = vrcp.f32 %v362_v23 }
  0x9e   : > { %v895_v24 = vpop.eup %894 }
  0x9f   : > { %v897_v25 = vpop.eup %896  ;;  %v365_v26 = vmul.f32 %v895_v24, %v336_v2 }
  0xa0   : > { %v369_v28 = vmul.f32 %v897_v25, %v338_v1 }
  0xa1   : > { %835 = vmatprep.mubr.msk.f32.mxu0 %vm377_vm1, %v365_v26 }
  0xa2   : > { %v899_v27 = vpop.eup %898 }
  0xa3   : > { %v367_v29 = vmul.f32 %v899_v27, %v337_v6  ;;  %v901_v30 = vpop.eup %900 }
  0xa4   : > { %v371_v31 = vmul.f32 %v901_v30, %v339_v3 }
  0xa5   : > { %836 = vmatmul.mubr.msk.f32.vlgmr.msra.gmra.mrb[0].mxu0 %vm377_vm1, %v367_v29 }
  0xa6   : > { %838 = vmatprep.mubr.msk.f32.mxu0 %vm377_vm1, %v369_v28 }
  0xa9   : > { %839 = vmatmul.mubr.msk.f32.gmra.mrb[2].mxu0 %vm377_vm1, %v371_v31 }
  0xe8   : > { %v845_v34 = vpop.f32.mrb[0].mxu1 }
  0xe9   : > { %v554_v36 = vpop.f32.mrb[1].mxu1 }
  0xec   : > { %v848_v39 = vpop.f32.mrb[2].mxu1 }
  0xed   : > { %v564_v41 = vpop.f32.mrb[3].mxu1 }
 0x178   : > { %v837_v42 = vpop.f32.mrb[0].mxu0 }
 0x179   : > { %v560_v44 = vadd.f32 %v845_v34, %v837_v42  ;;  %v456_v45 = vpop.f32.mrb[1].mxu0 }
 0x17a   : > { %v555_v46 = vadd.f32 %v554_v36, %v456_v45 }
 0x17b   : > { %v581_v47 = vadd.f32 %v798_v43, %v560_v44 }
 0x17c   : > { %v580_v48 = vadd.f32 %v798_v43, %v555_v46  ;;  %v840_v49 = vpop.f32.mrb[2].mxu0 }
 0x17d   : > { %v570_v50 = vadd.f32 %v848_v39, %v840_v49  ;;  %v466_v51 = vpop.f32.mrb[3].mxu0  ;;  %v585_v54 = vmax.f32 %v581_v47, 0.0 }
 0x17e   : > { %v584_v52 = vmax.f32 %v580_v48, 0.0  ;;  %v565_v53 = vadd.f32 %v564_v41, %v466_v51 }
 0x17f   : > { %v583_v55 = vadd.f32 %v798_v43, %v570_v50 }
 0x180   : > { %v582_v56 = vadd.f32 %v798_v43, %v565_v53  ;;  %857 = vmatprep.mubr.msk.f32.mxu1 %vm377_vm1, %v584_v52 }
 0x181   : > { %858 = vmatmul.mubr.msk.f32.vlgmr.msra.gmra.mrb[4].mxu1 %vm377_vm1, %v585_v54  ;;  %v587_v58 = vmax.f32 %v583_v55, 0.0 }
 0x182   : > { %v586_v57 = vmax.f32 %v582_v56, 0.0 }
 0x184   : > { %860 = vmatprep.mubr.msk.f32.mxu1 %vm377_vm1, %v586_v57 }
 0x185   : > { %861 = vmatmul.mubr.msk.f32.gmra.mrb[6].mxu1 %vm377_vm1, %v587_v58 }
 0x254   : > { %v859_v62 = vpop.f32.mrb[4].mxu1 }
 0x255   : > { %v683_v63 = vadd.f32 %v859_v62, %v799_v60  ;;  %v677_v1 = vpop.f32.mrb[5].mxu1 }
 0x256   : > { %v678_v2 = vadd.f32 %v799_v60, %v677_v1 }
 0x257   : > { %v704_v6 = vadd.f32 %v700_v0, %v683_v63 }
 0x258   : > { %v703_v3 = vadd.f32 %v699_v61, %v678_v2  ;;  %v862_v4 = vpop.f32.mrb[6].mxu1 }
 0x259   : > { %v693_v7 = vadd.f32 %v862_v4, %v799_v60  ;;  %v687_v9 = vpop.f32.mrb[7].mxu1  ;;  %708 = vst.msk [vmem:[%s330_s21 + $0x8] sm:$0xff] %vm475_vm0, %v704_v6 }
 0x25a   : > { %707 = vst.msk [vmem:[%s330_s21] sm:$0xff] %vm475_vm0, %v703_v3  ;;  %v688_v10 = vadd.f32 %v799_v60, %v687_v9 }
 0x25b   : > { %v706_v12 = vadd.f32 %v702_v8, %v693_v7 }
 0x25c   : > { %v705_v11 = vadd.f32 %v701_v5, %v688_v10 }
 0x25d   : > { %710 = vst.msk [vmem:[%s330_s21 + $0x18] sm:$0xff] %vm475_vm0, %v706_v12 }
 0x25e   : > { %709 = vst.msk [vmem:[%s330_s21 + $0x10] sm:$0xff] %vm475_vm0, %v705_v11 }
 0x25f PF: > { %s19_s29 = sadd.s32 1, %s908_s29  }
 0x260   : > { %p16_p4 = scmp.ge.s32.totalorder %s19_s29, 4  }
 0x262   :  { %18 = sbr.rel (!%p16_p4) target bundleno = 2 (0x2), region = 85 }

// kernel: meta_layer_forward.2
= control target key start
LH: loop header
LB: loop body
LE: loop exit
PB: predicated region body
PF: predicated region fallthrough
CT: control target
= control target key end

     0   :  { %s2862_s24 = smov 0   ;;  %s3368_s0 = inlined_call_operand.<no memory space> [shape: f32[1,1], index: 0, kind: input, shape index: {}]   ;;  %s3369_s1 = inlined_call_operand.vmem [shape: f32[256,8], index: 1, kind: input, shape index: {}]   ;;  %s3370_s2 = inlined_call_operand.vmem [shape: f32[256,8], index: 2, kind: input, shape index: {}]   ;;  %s3371_s3 = inlined_call_operand.vmem [shape: f32[256,8], index: 3, kind: input, shape index: {}]   ;;  %s3372_s4 = inlined_call_operand.vmem [shape: f32[8,32], index: 4, kind: input, shape index: {}]   ;;  %s3373_s5 = inlined_call_operand.vmem [shape: f32[8,32], index: 5, kind: input, shape index: {}]   ;;  %s3374_s6 = inlined_call_operand.vmem [shape: f32[8,32], index: 6, kind: input, shape index: {}]   ;;  %s3375_s7 = inlined_call_operand.vmem [shape: f32[1,32], index: 7, kind: input, shape index: {}]   ;;  %s3376_s8 = inlined_call_operand.vmem [shape: f32[32,8], index: 8, kind: input, shape index: {}]   ;;  %s3377_s9 = inlined_call_operand.vmem [shape: f32[1,8], index: 9, kind: input, shape index: {}]   ;;  %s3378_s10 = inlined_call_operand.vmem [shape: f32[8,32], index: 10, kind: input, shape index: {}]   ;;  %s3379_s11 = inlined_call_operand.vmem [shape: f32[8,32], index: 11, kind: input, shape index: {}]   ;;  %s3380_s12 = inlined_call_operand.vmem [shape: f32[1,32], index: 12, kind: input, shape index: {}]   ;;  %s3381_s13 = inlined_call_operand.vmem [shape: f32[32,33], index: 13, kind: input, shape index: {}]   ;;  %s3382_s14 = inlined_call_operand.vmem [shape: f32[1,33], index: 14, kind: input, shape index: {}]   ;;  %s3383_s15 = inlined_call_operand.vmem [shape: f32[256,8], index: 15, kind: output, shape index: {0}]   ;;  %s3384_s16 = inlined_call_operand.vmem [shape: f32[256,33], index: 16, kind: output, shape index: {1}]  }
   0x1   :  { %3385 = sst [smem:[#allocation3_spill]] %s3368_s0 }
   0x2   :  { %s3386_s23 = sld [smem:[#allocation3_spill]] }
   0x8   :  { %22 = sst [smem:[#allocation2]] %s3386_s23 }
   0x9 LB: > { %s2240_s25 = sadd.s32 4294967295, %s2772_s24   ;;  %p2244_p0 = scmp.ge.s32.totalorder %s2772_s24, 1  ;;  %s2772_s24 = sphi %s2862_s24, %s28_s24  }
   0xa   : > { %p489_p1 = scmp.lt.s32.totalorder %s2772_s24, 3 }
   0xc   : > { %p490_p2 = pnand %p2244_p0, %p489_p1 }
   0xd   : > { %v633_v0 = vld [vmem:[%s3373_s5] sm:$0xff] (!%p490_p2)  ;;  %s2245_s28 = sshll.u32 (!%p490_p2), %s2240_s25, 4  ;;  %v1271_v3 = vld [vmem:[%s3376_s8 + $0x8] sm:$0xff] (!%p490_p2)  ;;  %vm634_vm0 = vcmask (!%p490_p2), 64512   ;;  %v1272_v54 = vld [vmem:[%s3376_s8 + $0x10] sm:$0xff] (!%p490_p2)  ;;  %vm1281_vm1 = vcmask (!%p490_p2), 261120  }
   0xe   : > { %493 = sbr.rel (%p490_p2) target bundleno = 1006 (0x3ee), region = 80  ;;  %v632_v1 = vld [vmem:[%s3372_s4] sm:$0xff] (!%p490_p2)  ;;  %2498 = vmatprep.subr.mxu0 (!%p490_p2), %v633_v0  ;;  %p555_p3 = scmp.lt.s32.totalorder (!%p490_p2), %s2245_s28, 31  ;;  %2708 = vmatprep.subr.mxu1 (!%p490_p2), %v633_v0  ;;  %v1273_v55 = vld [vmem:[%s3376_s8 + $0x18] sm:$0xff] (!%p490_p2)  ;;  %vm2109_vm2 = vcmask (!%p490_p2), 269312  }
   0xf   : > { %v1270_v2 = vld [vmem:[%s3376_s8] sm:$0xff] (!%p490_p2)  ;;  %2499 = vmatpush3.msra.mxu0 (!%p490_p2), %v633_v0  ;;  %2709 = vmatpush3.msra.mxu1 (!%p490_p2), %v633_v0  ;;  %v2696_v56 = vpack.c.bf16 (!%p490_p2), %v1273_v55, %v1272_v54  ;;  %s1475_s25 = sld [smem:[#allocation2]] (!%p490_p2) }
  0x10   : > { %v2692_v4 = vpack.c.bf16 (!%p490_p2), %v1271_v3, %v1270_v2  ;;  %2524 = vmatprep.subr.mxu0 (!%p490_p2), %v632_v1  ;;  %v1021_v8 = vld [vmem:[%s3374_s6] sm:$0xff] (!%p490_p2) }
  0x11   : > { %v1527_v57 = vld [vmem:[%s3379_s11] sm:$0xff] (!%p490_p2) }
  0x12   : > { %2693 = vmatprep.subr.bf16.mxu1 (!%p490_p2), %v2692_v4  ;;  %v3113_v2 = vld [vmem:[%s3375_s7] ss:$0 sm:$0xff] (!%p490_p2) }
  0x15   : > { %s3388_s28 = smov (!%p555_p3, %s2245_s28), 31  ;;  %s1476_s26 = sadd.f32 1.0, %s1475_s25 }
  0x16   : > { %s2882_s20 = sshll.u32 %s3388_s28, 3 }
  0x17   : > { %s2888_s23 = scalar_lea.vmem %s3370_s2, %s2882_s20  ;;  %s2909_s29 = scalar_lea.vmem %s3369_s1, %s2882_s20 }
  0x18   : > { %v600_v5 = vld [vmem:[%s2888_s23] sm:$0xff]  ;;  %v601_v6 = vld [vmem:[%s2888_s23 + $0x8] sm:$0xff]  ;;  %v602_v7 = vld [vmem:[%s2888_s23 + $0x10] sm:$0xff]  ;;  %s3006_s17 = scalar_lea.vmem %s3371_s3, %s2882_s20  ;;  %s3180_s0 = scalar_lea.vmem %s3383_s15, %s2882_s20 }
  0x19   : > { %2500 = vmatprep.mubr.msk.f32.mxu0 %vm634_vm0, %v600_v5  ;;  %v603_v9 = vld [vmem:[%s2888_s23 + $0x18] sm:$0xff]  ;;  %v604_v10 = vld [vmem:[%s2888_s23 + $0x20] sm:$0xff]  ;;  %v605_v11 = vld [vmem:[%s2888_s23 + $0x28] sm:$0xff]  ;;  %s3331_s25 = scalar_lea.vmem %s3384_s16, %s2882_s20 }
  0x1a   : > { %2501 = vmatmul.mubr.msk.f32.vlgmr.msra.gmra.mrb[0].mxu0 %vm634_vm0, %v601_v6  ;;  %v606_v12 = vld [vmem:[%s2888_s23 + $0x30] sm:$0xff]  ;;  %v608_v13 = vld [vmem:[%s2888_s23 + $0x40] sm:$0xff]  ;;  %v607_v14 = vld [vmem:[%s2888_s23 + $0x38] sm:$0xff] }
  0x1b   : > { %2525 = vmatpush3.msra.mxu0 %v632_v1  ;;  %2503 = vmatprep.mubr.msk.f32.mxu0 %vm634_vm0, %v602_v7  ;;  %v609_v15 = vld [vmem:[%s2888_s23 + $0x48] sm:$0xff]  ;;  %v2918_v16 = vld [vmem:[%s2909_s29] sm:$0xff]  ;;  %v610_v17 = vld [vmem:[%s2888_s23 + $0x50] sm:$0xff] }
  0x1c   : > { %2550 = vmatprep.subr.mxu0 %v1021_v8  ;;  %2512 = vmatprep.mubr.msk.f32.mxu1 %vm634_vm0, %v608_v13  ;;  %v611_v18 = vld [vmem:[%s2888_s23 + $0x58] sm:$0xff]  ;;  %v612_v19 = vld [vmem:[%s2888_s23 + $0x60] sm:$0xff]  ;;  %v2929_v20 = vld [vmem:[%s2909_s29 + $0x8] sm:$0xff] }
  0x1d   : > { %2513 = vmatmul.mubr.msk.f32.vlgmr.msra.gmra.mrb[0].mxu1 %vm634_vm0, %v609_v15  ;;  %v2932_v21 = vld [vmem:[%s2909_s29 + $0x10] sm:$0xff]  ;;  %v613_v22 = vld [vmem:[%s2888_s23 + $0x68] sm:$0xff]  ;;  %v2943_v24 = vld [vmem:[%s2909_s29 + $0x18] sm:$0xff] }
  0x1e   : > { %2504 = vmatmul.mubr.msk.f32.gmra.mrb[2].mxu0 %vm634_vm0, %v603_v9  ;;  %2515 = vmatprep.mubr.msk.f32.mxu1 %vm634_vm0, %v610_v17  ;;  %v614_v23 = vld [vmem:[%s2888_s23 + $0x70] sm:$0xff]  ;;  %v2946_v25 = vld [vmem:[%s2909_s29 + $0x20] sm:$0xff]  ;;  %v615_v26 = vld [vmem:[%s2888_s23 + $0x78] sm:$0xff] }
  0x1f   : > { %2506 = vmatprep.mubr.msk.f32.mxu0 %vm634_vm0, %v604_v10  ;;  %2695 = vmatpush3.bf16.msra.mxu1 %v2692_v4  ;;  %v2956_v27 = vld [vmem:[%s2909_s29 + $0x28] sm:$0xff]  ;;  %v2959_v28 = vld [vmem:[%s2909_s29 + $0x30] sm:$0xff]  ;;  %v2967_v29 = vld [vmem:[%s2909_s29 + $0x38] sm:$0xff] }
  0x20   : > { %v2970_v30 = vld [vmem:[%s2909_s29 + $0x40] sm:$0xff]  ;;  %v2977_v31 = vld [vmem:[%s2909_s29 + $0x48] sm:$0xff]  ;;  %v2980_v32 = vld [vmem:[%s2909_s29 + $0x50] sm:$0xff]  ;;  %2697 = vmatprep.subr.bf16.mxu1 %v2696_v56 }
  0x21   : > { %2516 = vmatmul.mubr.msk.f32.gmra.mrb[2].mxu1 %vm634_vm0, %v611_v18  ;;  %v2987_v33 = vld [vmem:[%s2909_s29 + $0x58] sm:$0xff]  ;;  %v2990_v34 = vld [vmem:[%s2909_s29 + $0x60] sm:$0xff]  ;;  %v2997_v35 = vld [vmem:[%s2909_s29 + $0x68] sm:$0xff] }
  0x22   : > { %2507 = vmatmul.mubr.msk.f32.gmra.mrb[4].mxu0 %vm634_vm0, %v605_v11  ;;  %2518 = vmatprep.mubr.msk.f32.mxu1 %vm634_vm0, %v612_v19  ;;  %v3000_v36 = vld [vmem:[%s2909_s29 + $0x70] sm:$0xff]  ;;  %v3013_v37 = vld [vmem:[%s2909_s29 + $0x78] sm:$0xff]  ;;  %v3016_v38 = vld [vmem:[%s3006_s17] sm:$0xff] }
  0x23   : > { %2509 = vmatprep.mubr.msk.f32.mxu0 %vm634_vm0, %v606_v12  ;;  %v3023_v39 = vld [vmem:[%s3006_s17 + $0x8] sm:$0xff]  ;;  %v3026_v40 = vld [vmem:[%s3006_s17 + $0x10] sm:$0xff]  ;;  %v3033_v41 = vld [vmem:[%s3006_s17 + $0x18] sm:$0xff]  ;;  %2699 = vmatpush3.bf16.msra.mxu1 %v2696_v56 }
  0x24   : > { %v3036_v42 = vld [vmem:[%s3006_s17 + $0x20] sm:$0xff]  ;;  %v3043_v43 = vld [vmem:[%s3006_s17 + $0x28] sm:$0xff]  ;;  %v3046_v44 = vld [vmem:[%s3006_s17 + $0x30] sm:$0xff]  ;;  %2608 = vmatprep.subr.mxu1 %v1527_v57 }
  0x25   : > { %2519 = vmatmul.mubr.msk.f32.gmra.mrb[4].mxu1 %vm634_vm0, %v613_v22  ;;  %v3053_v45 = vld [vmem:[%s3006_s17 + $0x38] sm:$0xff]  ;;  %v3056_v46 = vld [vmem:[%s3006_s17 + $0x40] sm:$0xff]  ;;  %v3063_v47 = vld [vmem:[%s3006_s17 + $0x48] sm:$0xff] }
  0x26   : > { %2510 = vmatmul.mubr.msk.f32.gmra.mrb[6].mxu0 %vm634_vm0, %v607_v14  ;;  %2521 = vmatprep.mubr.msk.f32.mxu1 %vm634_vm0, %v614_v23  ;;  %v3066_v48 = vld [vmem:[%s3006_s17 + $0x50] sm:$0xff]  ;;  %v3073_v49 = vld [vmem:[%s3006_s17 + $0x58] sm:$0xff]  ;;  %v3076_v50 = vld [vmem:[%s3006_s17 + $0x60] sm:$0xff] }
  0x27   : > { %2526 = vmatprep.mubr.msk.f32.mxu0 %vm634_vm0, %v2918_v16  ;;  %v3083_v51 = vld [vmem:[%s3006_s17 + $0x68] sm:$0xff]  ;;  %v3086_v52 = vld [vmem:[%s3006_s17 + $0x70] sm:$0xff]  ;;  %v3093_v53 = vld [vmem:[%s3006_s17 + $0x78] sm:$0xff] }
  0x29   : > { %2522 = vmatmul.mubr.msk.f32.gmra.mrb[6].mxu1 %vm634_vm0, %v615_v26 }
  0x2a   : > { %2527 = vmatmul.mubr.msk.f32.vlgmr.msra.gmra.mrb[0].mxu0 %vm634_vm0, %v2929_v20 }
  0x2b   : > { %2551 = vmatpush3.msra.mxu0 %v1021_v8  ;;  %2529 = vmatprep.mubr.msk.f32.mxu0 %vm634_vm0, %v2932_v21 }
  0x2e   : > { %2530 = vmatmul.mubr.msk.f32.gmra.mrb[2].mxu0 %vm634_vm0, %v2943_v24 }
  0x2f   : > { %2532 = vmatprep.mubr.msk.f32.mxu0 %vm634_vm0, %v2946_v25 }
  0x32   : > { %2533 = vmatmul.mubr.msk.f32.gmra.mrb[4].mxu0 %vm634_vm0, %v2956_v27 }
  0x33   : > { %2535 = vmatprep.mubr.msk.f32.mxu0 %vm634_vm0, %v2959_v28 }
  0x36   : > { %2536 = vmatmul.mubr.msk.f32.gmra.mrb[6].mxu0 %vm634_vm0, %v2967_v29 }
  0x37   : > { %2538 = vmatprep.mubr.msk.f32.mxu0 %vm634_vm0, %v2970_v30 }
  0x3a   : > { %2539 = vmatmul.mubr.msk.f32.gmra.mrb[8].mxu0 %vm634_vm0, %v2977_v31 }
  0x3b   : > { %2541 = vmatprep.mubr.msk.f32.mxu0 %vm634_vm0, %v2980_v32 }
  0x3e   : > { %2542 = vmatmul.mubr.msk.f32.gmra.mrb[10].mxu0 %vm634_vm0, %v2987_v33 }
  0x3f   : > { %2544 = vmatprep.mubr.msk.f32.mxu0 %vm634_vm0, %v2990_v34 }
  0x42   : > { %2545 = vmatmul.mubr.msk.f32.gmra.mrb[12].mxu0 %vm634_vm0, %v2997_v35 }
  0x43   : > { %2547 = vmatprep.mubr.msk.f32.mxu0 %vm634_vm0, %v3000_v36 }
  0x46   : > { %2548 = vmatmul.mubr.msk.f32.gmra.mrb[14].mxu0 %vm634_vm0, %v3013_v37 }
  0x47   : > { %2552 = vmatprep.mubr.msk.f32.mxu0 %vm634_vm0, %v3016_v38 }
  0x4a   : > { %2553 = vmatmul.mubr.msk.f32.vlgmr.msra.gmra.mrb[0].mxu0 %vm634_vm0, %v3023_v39 }
  0x4b   : > { %2555 = vmatprep.mubr.msk.f32.mxu0 %vm634_vm0, %v3026_v40 }
  0x4e   : > { %2556 = vmatmul.mubr.msk.f32.gmra.mrb[2].mxu0 %vm634_vm0, %v3033_v41 }
  0x4f   : > { %2558 = vmatprep.mubr.msk.f32.mxu0 %vm634_vm0, %v3036_v42 }
  0x52   : > { %2559 = vmatmul.mubr.msk.f32.gmra.mrb[4].mxu0 %vm634_vm0, %v3043_v43 }
  0x53   : > { %2561 = vmatprep.mubr.msk.f32.mxu0 %vm634_vm0, %v3046_v44 }
  0x56   : > { %2562 = vmatmul.mubr.msk.f32.gmra.mrb[6].mxu0 %vm634_vm0, %v3053_v45 }
  0x57   : > { %2564 = vmatprep.mubr.msk.f32.mxu0 %vm634_vm0, %v3056_v46 }
  0x5a   : > { %2565 = vmatmul.mubr.msk.f32.gmra.mrb[8].mxu0 %vm634_vm0, %v3063_v47 }
  0x5b   : > { %2567 = vmatprep.mubr.msk.f32.mxu0 %vm634_vm0, %v3066_v48 }
  0x5e   : > { %2568 = vmatmul.mubr.msk.f32.gmra.mrb[10].mxu0 %vm634_vm0, %v3073_v49 }
  0x5f   : > { %2570 = vmatprep.mubr.msk.f32.mxu0 %vm634_vm0, %v3076_v50 }
  0x62   : > { %2571 = vmatmul.mubr.msk.f32.gmra.mrb[12].mxu0 %vm634_vm0, %v3083_v51 }
  0x63   : > { %2573 = vmatprep.mubr.msk.f32.mxu0 %vm634_vm0, %v3086_v52 }
  0x66   : > { %2574 = vmatmul.mubr.msk.f32.gmra.mrb[14].mxu0 %vm634_vm0, %v3093_v53 }
  0xf0   : > { %v2514_v58 = vpop.f32.mrb[0].mxu1 }
  0xf1   : > { %v789_v59 = vpop.f32.mrb[1].mxu1 }
  0xf4   : > { %v2517_v60 = vpop.f32.mrb[2].mxu1 }
  0xf5   : > { %v799_v61 = vpop.f32.mrb[3].mxu1 }
  0xf8   : > { %v2520_v62 = vpop.f32.mrb[4].mxu1 }
  0xf9   : > { %v809_v63 = vpop.f32.mrb[5].mxu1 }
  0xfc   : > { %v3106_v0 = vpop.f32.mrb[6].mxu1 }
  0xfd   : > { %v3108_v1 = vpop.f32.mrb[7].mxu1 }
 0x11d   : > { %v2554_v3 = vpop.f32.mrb[0].mxu0 }
 0x11e   : > { %v1239_v4 = vadd.f32 %v2554_v3, %v3113_v2  ;;  %v1136_v5 = vpop.f32.mrb[1].mxu0 }
 0x11f   : > { %v1238_v6 = vadd.f32 %v3113_v2, %v1136_v5 }
 0x120   : > { %v1255_v9 = vmax.f32 %v1239_v4, 0.0 }
 0x121   : > { %v1254_v7 = vmax.f32 %v1238_v6, 0.0  ;;  %v2557_v8 = vpop.f32.mrb[2].mxu0 }
 0x122   : > { %v1241_v10 = vadd.f32 %v2557_v8, %v3113_v2  ;;  %v1146_v11 = vpop.f32.mrb[3].mxu0 }
 0x123   : > { %v1240_v12 = vadd.f32 %v3113_v2, %v1146_v11  ;;  %2584 = vmatprep.mubr.msk.f32.mxu1 %vm1281_vm1, %v1254_v7 }
 0x124   : > { %2585 = vmatmul.mubr.msk.f32.vlgmr.msra.gmra.mrb[8].mxu1 %vm1281_vm1, %v1255_v9  ;;  %v1257_v15 = vmax.f32 %v1241_v10, 0.0 }
 0x125   : > { %v1256_v13 = vmax.f32 %v1240_v12, 0.0  ;;  %v2560_v14 = vpop.f32.mrb[4].mxu0  ;;  %2609 = vmatpush3.msra.mxu1 %v1527_v57 }
 0x126   : > { %v1243_v17 = vadd.f32 %v2560_v14, %v3113_v2  ;;  %v1156_v18 = vpop.f32.mrb[5].mxu0 }
 0x127   : > { %v1242_v19 = vadd.f32 %v3113_v2, %v1156_v18  ;;  %2587 = vmatprep.mubr.msk.f32.mxu1 %vm1281_vm1, %v1256_v13 }
 0x128   : > { %2588 = vmatmul.mubr.msk.f32.gmra.mrb[10].mxu1 %vm1281_vm1, %v1257_v15  ;;  %v1259_v26 = vmax.f32 %v1243_v17, 0.0 }
 0x129   : > { %v1258_v22 = vmax.f32 %v1242_v19, 0.0  ;;  %v2563_v23 = vpop.f32.mrb[6].mxu0 }
 0x12a   : > { %v1245_v54 = vadd.f32 %v2563_v23, %v3113_v2  ;;  %v1166_v55 = vpop.f32.mrb[7].mxu0 }
 0x12b   : > { %v1244_v56 = vadd.f32 %v3113_v2, %v1166_v55  ;;  %2590 = vmatprep.mubr.msk.f32.mxu1 %vm1281_vm1, %v1258_v22 }
 0x12c   : > { %2591 = vmatmul.mubr.msk.f32.gmra.mrb[12].mxu1 %vm1281_vm1, %v1259_v26  ;;  %v1261_v4 = vmax.f32 %v1245_v54, 0.0 }
 0x12d   : > { %v1260_v57 = vmax.f32 %v1244_v56, 0.0  ;;  %v2566_v3 = vpop.f32.mrb[8].mxu0 }
 0x12e   : > { %v2710_v5 = vadd.f32 %v2566_v3, %v2514_v58  ;;  %v1176_v6 = vpop.f32.mrb[9].mxu0 }
 0x12f   : > { %v2711_v7 = vadd.f32 %v1176_v6, %v789_v59  ;;  %2593 = vmatprep.mubr.msk.f32.mxu1 %vm1281_vm1, %v1260_v57 }
 0x130   : > { %v1247_v8 = vadd.f32 %v2710_v5, %v3113_v2  ;;  %2594 = vmatmul.mubr.msk.f32.gmra.mrb[14].mxu1 %vm1281_vm1, %v1261_v4 }
 0x131   : > { %v1246_v9 = vadd.f32 %v2711_v7, %v3113_v2  ;;  %v2569_v10 = vpop.f32.mrb[10].mxu0  ;;  %v1907_v7 = vld [vmem:[%s3381_s13 + $0x10] sm:$0xff] }
 0x132   : > { %v2712_v11 = vadd.f32 %v2569_v10, %v2517_v60  ;;  %v1186_v12 = vpop.f32.mrb[11].mxu0  ;;  %v1263_v15 = vmax.f32 %v1247_v8, 0.0 }
 0x133   : > { %v1262_v13 = vmax.f32 %v1246_v9, 0.0  ;;  %v2713_v14 = vadd.f32 %v1186_v12, %v799_v61  ;;  %v1908_v9 = vld [vmem:[%s3381_s13 + $0x18] sm:$0xff]  ;;  %v3169_v12 = vld [vmem:[%s3377_s9] ss:$0 sm:$0xff] }
 0x134   : > { %v1249_v17 = vadd.f32 %v2712_v11, %v3113_v2  ;;  %v2704_v10 = vpack.c.bf16 %v1908_v9, %v1907_v7  ;;  %v3164_v11 = vstv %s1476_s26 }
 0x135   : > { %v1248_v58 = vadd.f32 %v2713_v14, %v3113_v2  ;;  %v2572_v18 = vpop.f32.mrb[12].mxu0  ;;  %2596 = vmatprep.mubr.msk.f32.mxu1 %vm1281_vm1, %v1262_v13  ;;  %v1479_v13 = vmul.f32 %v3164_v11, %v3023_v39  ;;  %v1481_v39 = vmul.f32 %v3164_v11, %v3033_v41  ;;  %v1483_v41 = vmul.f32 %v3164_v11, %v3043_v43 }
 0x136   : > { %v2714_v59 = vadd.f32 %v2572_v18, %v2520_v62  ;;  %v1196_v19 = vpop.f32.mrb[13].mxu0  ;;  %2597 = vmatmul.mubr.msk.f32.gmra.mrb[16].mxu1 %vm1281_vm1, %v1263_v15  ;;  %v1265_v26 = vmax.f32 %v1249_v17, 0.0  ;;  %v1478_v15 = vmul.f32 %v3164_v11, %v3016_v38  ;;  %v1480_v38 = vmul.f32 %v3164_v11, %v3026_v40 }
 0x137   : > { %v1264_v22 = vmax.f32 %v1248_v58, 0.0  ;;  %v2715_v23 = vadd.f32 %v1196_v19, %v809_v63  ;;  %v1486_v7 = vmul.f32 %v3164_v11, %v3056_v46 }
 0x138   : > { %v1251_v60 = vadd.f32 %v2714_v59, %v3113_v2 }
 0x139   : > { %v1250_v54 = vadd.f32 %v2715_v23, %v3113_v2  ;;  %v2575_v61 = vpop.f32.mrb[14].mxu0  ;;  %2599 = vmatprep.mubr.msk.f32.mxu1 %vm1281_vm1, %v1264_v22 }
 0x13a   : > { %v2716_v55 = vadd.f32 %v2575_v61, %v3106_v0  ;;  %v1206_v56 = vpop.f32.mrb[15].mxu0  ;;  %2600 = vmatmul.mubr.msk.f32.gmra.mrb[18].mxu1 %vm1281_vm1, %v1265_v26  ;;  %v1267_v3 = vmax.f32 %v1251_v60, 0.0  ;;  %v1526_v0 = vld [vmem:[%s3378_s10] sm:$0xff] }
 0x13b   : > { %v1266_v57 = vmax.f32 %v1250_v54, 0.0  ;;  %v2717_v62 = vadd.f32 %v1206_v56, %v3108_v1  ;;  %2634 = vmatprep.subr.mxu1 %v1526_v0  ;;  %v1905_v1 = vld [vmem:[%s3381_s13] sm:$0xff] }
 0x13c   : > { %v1253_v4 = vadd.f32 %v2716_v55, %v3113_v2  ;;  %v1482_v55 = vmul.f32 %v3164_v11, %v3036_v42  ;;  %v1485_v42 = vmul.f32 %v3164_v11, %v3053_v45 }
 0x13d   : > { %v1252_v63 = vadd.f32 %v2717_v62, %v3113_v2  ;;  %2602 = vmatprep.mubr.msk.f32.mxu1 %vm1281_vm1, %v1266_v57  ;;  %v1906_v2 = vld [vmem:[%s3381_s13 + $0x8] sm:$0xff] }
 0x13e   : > { %2603 = vmatmul.mubr.msk.f32.gmra.mrb[20].mxu1 %vm1281_vm1, %v1267_v3  ;;  %v1269_v6 = vmax.f32 %v1253_v4, 0.0  ;;  %v2700_v8 = vpack.c.bf16 %v1906_v2, %v1905_v1 }
 0x13f   : > { %v1268_v5 = vmax.f32 %v1252_v63, 0.0  ;;  %v1484_v63 = vmul.f32 %v3164_v11, %v3046_v44  ;;  %v1487_v44 = vmul.f32 %v3164_v11, %v3063_v47  ;;  %v1489_v47 = vmul.f32 %v3164_v11, %v3073_v49 }
 0x140   : > { %2701 = vmatprep.subr.bf16.mxu0 %v2700_v8  ;;  %v1491_v49 = vmul.f32 %v3164_v11, %v3083_v51 }
 0x141   : > { %2605 = vmatprep.mubr.msk.f32.mxu1 %vm1281_vm1, %v1268_v5  ;;  %2703 = vmatpush3.bf16.msra.mxu0 %v2700_v8 }
 0x142   : > { %2606 = vmatmul.mubr.msk.f32.gmra.mrb[22].mxu1 %vm1281_vm1, %v1269_v6  ;;  %2705 = vmatprep.subr.bf16.mxu0 %v2704_v10 }
 0x145   : > { %2707 = vmatpush3.bf16.msra.mxu0 %v2704_v10 }
 0x1f7   : > { %v2586_v14 = vpop.f32.mrb[8].mxu1 }
 0x1f8   : > { %v1402_v17 = vadd.f32 %v2586_v14, %v3169_v12  ;;  %v1396_v58 = vpop.f32.mrb[9].mxu1 }
 0x1f9   : > { %v1397_v18 = vadd.f32 %v3169_v12, %v1396_v58 }
 0x1fa   : > { %v1495_v59 = vadd.f32 %v1479_v13, %v1402_v17  ;;  %v1488_v17 = vmul.f32 %v3164_v11, %v3066_v48 }
 0x1fb   : > { %v1494_v19 = vadd.f32 %v1478_v15, %v1397_v18  ;;  %v2589_v22 = vpop.f32.mrb[10].mxu1 }
 0x1fc   : > { %1511 = vst.msk [vmem:[%s3180_s0 + $0x8] sm:$0xff] %vm634_vm0, %v1495_v59  ;;  %v1412_v23 = vadd.f32 %v2589_v22, %v3169_v12  ;;  %v1406_v26 = vpop.f32.mrb[11].mxu1 }
 0x1fd   : > { %1510 = vst.msk [vmem:[%s3180_s0] sm:$0xff] %vm634_vm0, %v1494_v19  ;;  %v1407_v60 = vadd.f32 %v3169_v12, %v1406_v26  ;;  %2610 = vmatprep.mubr.msk.f32.mxu1 %vm634_vm0, %v1494_v19  ;;  %v1490_v19 = vmul.f32 %v3164_v11, %v3076_v50  ;;  %v1493_v50 = vmul.f32 %v3164_v11, %v3093_v53 }
 0x1fe   : > { %v1497_v54 = vadd.f32 %v1481_v39, %v1412_v23  ;;  %2611 = vmatmul.mubr.msk.f32.vlgmr.msra.gmra.mrb[24].mxu1 %vm634_vm0, %v1495_v59 }
 0x1ff   : > { %v1496_v61 = vadd.f32 %v1480_v38, %v1407_v60  ;;  %v2592_v40 = vpop.f32.mrb[12].mxu1  ;;  %2635 = vmatpush3.msra.mxu1 %v1526_v0 }
 0x200   : > { %1513 = vst.msk [vmem:[%s3180_s0 + $0x18] sm:$0xff] %vm634_vm0, %v1497_v54  ;;  %v1422_v56 = vadd.f32 %v2592_v40, %v3169_v12  ;;  %v1416_v57 = vpop.f32.mrb[13].mxu1 }
 0x201   : > { %1512 = vst.msk [vmem:[%s3180_s0 + $0x10] sm:$0xff] %vm634_vm0, %v1496_v61  ;;  %v1417_v62 = vadd.f32 %v3169_v12, %v1416_v57  ;;  %2613 = vmatprep.mubr.msk.f32.mxu1 %vm634_vm0, %v1496_v61 }
 0x202   : > { %v1499_v43 = vadd.f32 %v1483_v41, %v1422_v56  ;;  %2614 = vmatmul.mubr.msk.f32.gmra.mrb[26].mxu1 %vm634_vm0, %v1497_v54  ;;  %v1492_v54 = vmul.f32 %v3164_v11, %v3086_v52 }
 0x203   : > { %v1498_v3 = vadd.f32 %v1482_v55, %v1417_v62  ;;  %v2595_v4 = vpop.f32.mrb[14].mxu1 }
 0x204   : > { %1515 = vst.msk [vmem:[%s3180_s0 + $0x28] sm:$0xff] %vm634_vm0, %v1499_v43  ;;  %v1432_v5 = vadd.f32 %v2595_v4, %v3169_v12  ;;  %v1426_v6 = vpop.f32.mrb[15].mxu1 }
 0x205   : > { %1514 = vst.msk [vmem:[%s3180_s0 + $0x20] sm:$0xff] %vm634_vm0, %v1498_v3  ;;  %v1427_v0 = vadd.f32 %v3169_v12, %v1426_v6  ;;  %2616 = vmatprep.mubr.msk.f32.mxu1 %vm634_vm0, %v1498_v3 }
 0x206   : > { %v1501_v1 = vadd.f32 %v1485_v42, %v1432_v5  ;;  %2617 = vmatmul.mubr.msk.f32.gmra.mrb[28].mxu1 %vm634_vm0, %v1499_v43 }
 0x207   : > { %v1500_v45 = vadd.f32 %v1484_v63, %v1427_v0 }
 0x208   : > { %1517 = vst.msk [vmem:[%s3180_s0 + $0x38] sm:$0xff] %vm634_vm0, %v1501_v1 }
 0x209   : > { %1516 = vst.msk [vmem:[%s3180_s0 + $0x30] sm:$0xff] %vm634_vm0, %v1500_v45  ;;  %v2598_v2 = vpop.f32.mrb[16].mxu1  ;;  %2619 = vmatprep.mubr.msk.f32.mxu1 %vm634_vm0, %v1500_v45 }
 0x20a   : > { %v1442_v8 = vadd.f32 %v2598_v2, %v3169_v12  ;;  %v1436_v9 = vpop.f32.mrb[17].mxu1  ;;  %2620 = vmatmul.mubr.msk.f32.gmra.mrb[30].mxu1 %vm634_vm0, %v1501_v1 }
 0x20b   : > { %v1437_v10 = vadd.f32 %v3169_v12, %v1436_v9 }
 0x20c   : > { %v1503_v13 = vadd.f32 %v1487_v44, %v1442_v8 }
 0x20d   : > { %v1502_v14 = vadd.f32 %v1486_v7, %v1437_v10  ;;  %v2601_v15 = vpop.f32.mrb[18].mxu1 }
 0x20e   : > { %1519 = vst.msk [vmem:[%s3180_s0 + $0x48] sm:$0xff] %vm634_vm0, %v1503_v13  ;;  %v1452_v46 = vadd.f32 %v2601_v15, %v3169_v12  ;;  %v1446_v58 = vpop.f32.mrb[19].mxu1 }
 0x20f   : > { %1518 = vst.msk [vmem:[%s3180_s0 + $0x40] sm:$0xff] %vm634_vm0, %v1502_v14  ;;  %v1447_v18 = vadd.f32 %v3169_v12, %v1446_v58  ;;  %2622 = vmatprep.mubr.msk.f32.mxu1 %vm634_vm0, %v1502_v14 }
 0x210   : > { %v1505_v59 = vadd.f32 %v1489_v47, %v1452_v46  ;;  %2623 = vmatmul.mubr.msk.f32.gmra.mrb[32].mxu1 %vm634_vm0, %v1503_v13 }
 0x211   : > { %v1504_v48 = vadd.f32 %v1488_v17, %v1447_v18  ;;  %v2604_v39 = vpop.f32.mrb[20].mxu1 }
 0x212   : > { %1521 = vst.msk [vmem:[%s3180_s0 + $0x58] sm:$0xff] %vm634_vm0, %v1505_v59  ;;  %v1462_v22 = vadd.f32 %v2604_v39, %v3169_v12  ;;  %v1456_v38 = vpop.f32.mrb[21].mxu1  ;;  %v2354_v39 = vld [vmem:[%s3382_s14] ss:$0 sm:$0xff] }
 0x213   : > { %1520 = vst.msk [vmem:[%s3180_s0 + $0x50] sm:$0xff] %vm634_vm0, %v1504_v48  ;;  %v1457_v23 = vadd.f32 %v3169_v12, %v1456_v38  ;;  %2625 = vmatprep.mubr.msk.f32.mxu1 %vm634_vm0, %v1504_v48 }
 0x214   : > { %v1507_v51 = vadd.f32 %v1491_v49, %v1462_v22  ;;  %2626 = vmatmul.mubr.msk.f32.gmra.mrb[34].mxu1 %vm634_vm0, %v1505_v59 }
 0x215   : > { %v1506_v26 = vadd.f32 %v1490_v19, %v1457_v23  ;;  %v2607_v60 = vpop.f32.mrb[22].mxu1 }
 0x216   : > { %1523 = vst.msk [vmem:[%s3180_s0 + $0x68] sm:$0xff] %vm634_vm0, %v1507_v51  ;;  %v1472_v41 = vadd.f32 %v2607_v60, %v3169_v12  ;;  %v1466_v61 = vpop.f32.mrb[23].mxu1 }
 0x217   : > { %1522 = vst.msk [vmem:[%s3180_s0 + $0x60] sm:$0xff] %vm634_vm0, %v1506_v26  ;;  %v1467_v40 = vadd.f32 %v3169_v12, %v1466_v61  ;;  %2628 = vmatprep.mubr.msk.f32.mxu1 %vm634_vm0, %v1506_v26 }
 0x218   : > { %v1509_v55 = vadd.f32 %v1493_v50, %v1472_v41  ;;  %2629 = vmatmul.mubr.msk.f32.gmra.mrb[36].mxu1 %vm634_vm0, %v1507_v51 }
 0x219   : > { %v1508_v53 = vadd.f32 %v1492_v54, %v1467_v40 }
 0x21a   : > { %1525 = vst.msk [vmem:[%s3180_s0 + $0x78] sm:$0xff] %vm634_vm0, %v1509_v55 }
 0x21b   : > { %1524 = vst.msk [vmem:[%s3180_s0 + $0x70] sm:$0xff] %vm634_vm0, %v1508_v53  ;;  %2631 = vmatprep.mubr.msk.f32.mxu1 %vm634_vm0, %v1508_v53 }
 0x21c   : > { %2632 = vmatmul.mubr.msk.f32.gmra.mrb[38].mxu1 %vm634_vm0, %v1509_v55 }
 0x21d   : > { %2636 = vmatprep.mubr.msk.f32.mxu1 %vm634_vm0, %v2918_v16  ;;  %v2353_v16 = vld [vmem:[%s3380_s12] ss:$0 sm:$0xff] }
 0x220   : > { %2637 = vmatmul.mubr.msk.f32.vlgmr.msra.gmra.mrb[24].mxu1 %vm634_vm0, %v2929_v20 }
 0x221   : > { %2639 = vmatprep.mubr.msk.f32.mxu1 %vm634_vm0, %v2932_v21 }
 0x224   : > { %2640 = vmatmul.mubr.msk.f32.gmra.mrb[26].mxu1 %vm634_vm0, %v2943_v24 }
 0x225   : > { %2642 = vmatprep.mubr.msk.f32.mxu1 %vm634_vm0, %v2946_v25 }
 0x228   : > { %2643 = vmatmul.mubr.msk.f32.gmra.mrb[28].mxu1 %vm634_vm0, %v2956_v27 }
 0x229   : > { %2645 = vmatprep.mubr.msk.f32.mxu1 %vm634_vm0, %v2959_v28 }
 0x22c   : > { %2646 = vmatmul.mubr.msk.f32.gmra.mrb[30].mxu1 %vm634_vm0, %v2967_v29 }
 0x22d   : > { %2648 = vmatprep.mubr.msk.f32.mxu1 %vm634_vm0, %v2970_v30 }
 0x230   : > { %2649 = vmatmul.mubr.msk.f32.gmra.mrb[32].mxu1 %vm634_vm0, %v2977_v31 }
 0x231   : > { %2651 = vmatprep.mubr.msk.f32.mxu1 %vm634_vm0, %v2980_v32 }
 0x234   : > { %2652 = vmatmul.mubr.msk.f32.gmra.mrb[34].mxu1 %vm634_vm0, %v2987_v33 }
 0x235   : > { %2654 = vmatprep.mubr.msk.f32.mxu1 %vm634_vm0, %v2990_v34 }
 0x238   : > { %2655 = vmatmul.mubr.msk.f32.gmra.mrb[36].mxu1 %vm634_vm0, %v2997_v35 }
 0x239   : > { %2657 = vmatprep.mubr.msk.f32.mxu1 %vm634_vm0, %v3000_v36 }
 0x23c   : > { %2658 = vmatmul.mubr.msk.f32.gmra.mrb[38].mxu1 %vm634_vm0, %v3013_v37 }
 0x2f3   : > { %v2638_v20 = vpop.f32.mrb[24].mxu1 }
 0x2f4   : > { %v1874_v21 = vadd.f32 %v2638_v20, %v2353_v16  ;;  %v1787_v24 = vpop.f32.mrb[25].mxu1 }
 0x2f5   : > { %v1873_v25 = vadd.f32 %v2353_v16, %v1787_v24 }
 0x2f6   : > { %v1890_v29 = vmax.f32 %v1874_v21, 0.0 }
 0x2f7   : > { %v1889_v27 = vmax.f32 %v1873_v25, 0.0  ;;  %v2641_v28 = vpop.f32.mrb[26].mxu1 }
 0x2f8   : > { %v1876_v30 = vadd.f32 %v2641_v28, %v2353_v16  ;;  %v1797_v31 = vpop.f32.mrb[27].mxu1 }
 0x2f9   : > { %v1875_v32 = vadd.f32 %v2353_v16, %v1797_v31  ;;  %2668 = vmatprep.mubr.msk.f32.mxu0 %vm1281_vm1, %v1889_v27 }
 0x2fa   : > { %2669 = vmatmul.mubr.msk.f32.vlgmr.msra.gmra.mrb[16].mxu0 %vm1281_vm1, %v1890_v29  ;;  %v1892_v35 = vmax.f32 %v1876_v30, 0.0 }
 0x2fb   : > { %v1891_v33 = vmax.f32 %v1875_v32, 0.0  ;;  %v2644_v34 = vpop.f32.mrb[28].mxu1 }
 0x2fc   : > { %v1878_v36 = vadd.f32 %v2644_v34, %v2353_v16  ;;  %v1807_v37 = vpop.f32.mrb[29].mxu1 }
 0x2fd   : > { %v1877_v52 = vadd.f32 %v2353_v16, %v1807_v37  ;;  %2671 = vmatprep.mubr.msk.f32.mxu0 %vm1281_vm1, %v1891_v33 }
 0x2fe   : > { %2672 = vmatmul.mubr.msk.f32.gmra.mrb[18].mxu0 %vm1281_vm1, %v1892_v35  ;;  %v1894_v56 = vmax.f32 %v1878_v36, 0.0 }
 0x2ff   : > { %v1893_v11 = vmax.f32 %v1877_v52, 0.0  ;;  %v2647_v12 = vpop.f32.mrb[30].mxu1 }
 0x300   : > { %v1880_v57 = vadd.f32 %v2647_v12, %v2353_v16  ;;  %v1817_v62 = vpop.f32.mrb[31].mxu1 }
 0x301   : > { %v1879_v43 = vadd.f32 %v2353_v16, %v1817_v62  ;;  %2674 = vmatprep.mubr.msk.f32.mxu0 %vm1281_vm1, %v1893_v11 }
 0x302   : > { %2675 = vmatmul.mubr.msk.f32.gmra.mrb[20].mxu0 %vm1281_vm1, %v1894_v56  ;;  %v1896_v4 = vmax.f32 %v1880_v57, 0.0 }
 0x303   : > { %v1895_v42 = vmax.f32 %v1879_v43, 0.0  ;;  %v2650_v3 = vpop.f32.mrb[32].mxu1 }
 0x304   : > { %v1882_v63 = vadd.f32 %v2650_v3, %v2353_v16  ;;  %v1827_v5 = vpop.f32.mrb[33].mxu1 }
 0x305   : > { %v1881_v6 = vadd.f32 %v2353_v16, %v1827_v5  ;;  %2677 = vmatprep.mubr.msk.f32.mxu0 %vm1281_vm1, %v1895_v42 }
 0x306   : > { %2678 = vmatmul.mubr.msk.f32.gmra.mrb[22].mxu0 %vm1281_vm1, %v1896_v4  ;;  %v1898_v45 = vmax.f32 %v1882_v63, 0.0 }
 0x307   : > { %v1897_v0 = vmax.f32 %v1881_v6, 0.0  ;;  %v2653_v1 = vpop.f32.mrb[34].mxu1 }
 0x308   : > { %v1884_v44 = vadd.f32 %v2653_v1, %v2353_v16  ;;  %v1837_v2 = vpop.f32.mrb[35].mxu1 }
 0x309   : > { %v1883_v7 = vadd.f32 %v2353_v16, %v1837_v2  ;;  %2680 = vmatprep.mubr.msk.f32.mxu0 %vm1281_vm1, %v1897_v0 }
 0x30a   : > { %2681 = vmatmul.mubr.msk.f32.gmra.mrb[24].mxu0 %vm1281_vm1, %v1898_v45  ;;  %v1900_v10 = vmax.f32 %v1884_v44, 0.0 }
 0x30b   : > { %v1899_v8 = vmax.f32 %v1883_v7, 0.0  ;;  %v2656_v9 = vpop.f32.mrb[36].mxu1 }
 0x30c   : > { %v1886_v13 = vadd.f32 %v2656_v9, %v2353_v16  ;;  %v1847_v47 = vpop.f32.mrb[37].mxu1 }
 0x30d   : > { %v1885_v14 = vadd.f32 %v2353_v16, %v1847_v47  ;;  %2683 = vmatprep.mubr.msk.f32.mxu0 %vm1281_vm1, %v1899_v8 }
 0x30e   : > { %2684 = vmatmul.mubr.msk.f32.gmra.mrb[26].mxu0 %vm1281_vm1, %v1900_v10  ;;  %v1902_v46 = vmax.f32 %v1886_v13, 0.0 }
 0x30f   : > { %v1901_v15 = vmax.f32 %v1885_v14, 0.0  ;;  %v2659_v17 = vpop.f32.mrb[38].mxu1 }
 0x310   : > { %v1888_v58 = vadd.f32 %v2659_v17, %v2353_v16  ;;  %v1857_v18 = vpop.f32.mrb[39].mxu1 }
 0x311   : > { %v1887_v59 = vadd.f32 %v2353_v16, %v1857_v18  ;;  %2686 = vmatprep.mubr.msk.f32.mxu0 %vm1281_vm1, %v1901_v15 }
 0x312   : > { %2687 = vmatmul.mubr.msk.f32.gmra.mrb[28].mxu0 %vm1281_vm1, %v1902_v46  ;;  %v1904_v48 = vmax.f32 %v1888_v58, 0.0 }
 0x313   : > { %v1903_v49 = vmax.f32 %v1887_v59, 0.0 }
 0x315   : > { %2689 = vmatprep.mubr.msk.f32.mxu0 %vm1281_vm1, %v1903_v49 }
 0x316   : > { %2690 = vmatmul.mubr.msk.f32.gmra.mrb[30].mxu0 %vm1281_vm1, %v1904_v48 }
 0x3cd   : > { %v2670_v19 = vpop.f32.mrb[16].mxu0 }
 0x3ce   : > { %v2036_v22 = vadd.f32 %v2670_v19, %v2354_v39  ;;  %v2030_v38 = vpop.f32.mrb[17].mxu0 }
 0x3cf   : > { %v2031_v23 = vadd.f32 %v2354_v39, %v2030_v38 }
 0x3d0   : > { %2111 = vst.msk [vmem:[%s3331_s25 + $0x8] sm:$0xff] %vm2109_vm2, %v2036_v22 }
 0x3d1   : > { %2110 = vst.msk [vmem:[%s3331_s25] sm:$0xff] %vm2109_vm2, %v2031_v23  ;;  %v2673_v51 = vpop.f32.mrb[18].mxu0 }
 0x3d2   : > { %v2046_v50 = vadd.f32 %v2673_v51, %v2354_v39  ;;  %v2040_v26 = vpop.f32.mrb[19].mxu0 }
 0x3d3   : > { %v2041_v60 = vadd.f32 %v2354_v39, %v2040_v26 }
 0x3d4   : > { %2113 = vst.msk [vmem:[%s3331_s25 + $0x18] sm:$0xff] %vm2109_vm2, %v2046_v50 }
 0x3d5   : > { %2112 = vst.msk [vmem:[%s3331_s25 + $0x10] sm:$0xff] %vm2109_vm2, %v2041_v60  ;;  %v2676_v54 = vpop.f32.mrb[20].mxu0 }
 0x3d6   : > { %v2056_v41 = vadd.f32 %v2676_v54, %v2354_v39  ;;  %v2050_v61 = vpop.f32.mrb[21].mxu0 }
 0x3d7   : > { %v2051_v40 = vadd.f32 %v2354_v39, %v2050_v61 }
 0x3d8   : > { %2115 = vst.msk [vmem:[%s3331_s25 + $0x28] sm:$0xff] %vm2109_vm2, %v2056_v41 }
 0x3d9   : > { %2114 = vst.msk [vmem:[%s3331_s25 + $0x20] sm:$0xff] %vm2109_vm2, %v2051_v40  ;;  %v2679_v55 = vpop.f32.mrb[22].mxu0 }
 0x3da   : > { %v2066_v53 = vadd.f32 %v2679_v55, %v2354_v39  ;;  %v2060_v16 = vpop.f32.mrb[23].mxu0 }
 0x3db   : > { %v2061_v20 = vadd.f32 %v2354_v39, %v2060_v16 }
 0x3dc   : > { %2117 = vst.msk [vmem:[%s3331_s25 + $0x38] sm:$0xff] %vm2109_vm2, %v2066_v53 }
 0x3dd   : > { %2116 = vst.msk [vmem:[%s3331_s25 + $0x30] sm:$0xff] %vm2109_vm2, %v2061_v20  ;;  %v2682_v21 = vpop.f32.mrb[24].mxu0 }
 0x3de   : > { %v2076_v24 = vadd.f32 %v2682_v21, %v2354_v39  ;;  %v2070_v25 = vpop.f32.mrb[25].mxu0 }
 0x3df   : > { %v2071_v27 = vadd.f32 %v2354_v39, %v2070_v25 }
 0x3e0   : > { %2119 = vst.msk [vmem:[%s3331_s25 + $0x48] sm:$0xff] %vm2109_vm2, %v2076_v24 }
 0x3e1   : > { %2118 = vst.msk [vmem:[%s3331_s25 + $0x40] sm:$0xff] %vm2109_vm2, %v2071_v27  ;;  %v2685_v28 = vpop.f32.mrb[26].mxu0 }
 0x3e2   : > { %v2086_v29 = vadd.f32 %v2685_v28, %v2354_v39  ;;  %v2080_v30 = vpop.f32.mrb[27].mxu0 }
 0x3e3   : > { %v2081_v31 = vadd.f32 %v2354_v39, %v2080_v30 }
 0x3e4   : > { %2121 = vst.msk [vmem:[%s3331_s25 + $0x58] sm:$0xff] %vm2109_vm2, %v2086_v29 }
 0x3e5   : > { %2120 = vst.msk [vmem:[%s3331_s25 + $0x50] sm:$0xff] %vm2109_vm2, %v2081_v31  ;;  %v2688_v32 = vpop.f32.mrb[28].mxu0 }
 0x3e6   : > { %v2096_v33 = vadd.f32 %v2688_v32, %v2354_v39  ;;  %v2090_v34 = vpop.f32.mrb[29].mxu0 }
 0x3e7   : > { %v2091_v35 = vadd.f32 %v2354_v39, %v2090_v34 }
 0x3e8   : > { %2123 = vst.msk [vmem:[%s3331_s25 + $0x68] sm:$0xff] %vm2109_vm2, %v2096_v33 }
 0x3e9   : > { %2122 = vst.msk [vmem:[%s3331_s25 + $0x60] sm:$0xff] %vm2109_vm2, %v2091_v35  ;;  %v2691_v36 = vpop.f32.mrb[30].mxu0 }
 0x3ea   : > { %v2106_v37 = vadd.f32 %v2691_v36, %v2354_v39  ;;  %v2100_v52 = vpop.f32.mrb[31].mxu0 }
 0x3eb   : > { %v2101_v11 = vadd.f32 %v2354_v39, %v2100_v52 }
 0x3ec   : > { %2125 = vst.msk [vmem:[%s3331_s25 + $0x78] sm:$0xff] %vm2109_vm2, %v2106_v37 }
 0x3ed   : > { %2124 = vst.msk [vmem:[%s3331_s25 + $0x70] sm:$0xff] %vm2109_vm2, %v2101_v11 }
 0x3ee PF: > { %s28_s24 = sadd.s32 1, %s2772_s24  }
 0x3ef   : > { %p25_p4 = scmp.ge.s32.totalorder %s28_s24, 4  }
 0x3f1   :  { %27 = sbr.rel (!%p25_p4) target bundleno = 9 (0x9), region = 128 }

</bundles_post_ra>
